<compile_context>
chip_gen: v7x
topology: tpu7x:2x2x1
jax: 0.10.0
libtpu: 0.0.40
codegen_flags: <defaults>
</compile_context>

<pallas_src>
import math

import jax
import jax.numpy as jnp
from jax import lax
from jax.experimental import pallas as pl
from jax.experimental.pallas import tpu as pltpu

# ---------------- synthetic "small GPT-2" config ----------------
B, T = 2, 8          # batch, sequence length
D = 32               # hidden size
H = 4                # attention heads
DH = D // H          # head dim
L = 2                # transformer layers
VOCAB = 64           # vocab (synthetic; stands in for 50257 + [MASK])
VOCAB_PAD = 128      # lane-dense padded vocab (multiple of 128)
NPOS = 16            # max positions
EPS = 1e-5           # LayerNorm epsilon (GPT-2 default)


# ---------------- fused forward kernel (one batch element per grid step) ----
def _gpt2_fwd_kernel(x_ref,
                     ln1_g_ref, ln1_b_ref, w_qkv_ref, b_qkv_ref,
                     w_ao_ref, b_ao_ref, ln2_g_ref, ln2_b_ref,
                     w_fc_ref, b_fc_ref, w_mo_ref, b_mo_ref,
                     lnf_g_ref, lnf_b_ref, wte_t_ref,
                     logits_ref, o_buf):
    x = x_ref[...]                                          # (T, D) f32

    def ln(v, g, b):
        mu = jnp.mean(v, axis=-1, keepdims=True)
        var = jnp.mean((v - mu) ** 2, axis=-1, keepdims=True)
        return (v - mu) * lax.rsqrt(var + EPS) * g + b

    # causal mask built once as (T, T) bool
    row = lax.broadcasted_iota(jnp.int32, (T, T), 0)
    col = lax.broadcasted_iota(jnp.int32, (T, T), 1)
    causal = col <= row
    scale = 1.0 / math.sqrt(DH)

    for li in range(L):                                     # unrolled: L = 2
        # ---- attention sub-block ----
        a = ln(x, ln1_g_ref[li], ln1_b_ref[li])
        qkv = jnp.dot(a.astype(jnp.bfloat16), w_qkv_ref[li],
                      preferred_element_type=jnp.float32) + b_qkv_ref[li]   # (T, 3D) f32

        for h in range(H):                                  # unrolled: H = 4
            q_h = qkv[:, h * DH:(h + 1) * DH].astype(jnp.bfloat16)
            k_h = qkv[:, D + h * DH:D + (h + 1) * DH].astype(jnp.bfloat16)
            v_h = qkv[:, 2 * D + h * DH:2 * D + (h + 1) * DH].astype(jnp.bfloat16)

            # scores: contract head dims directly (no k transpose materialized)
            s = lax.dot_general(q_h, k_h, (((1,), (1,)), ((), ())),
                                preferred_element_type=jnp.float32) * scale  # (T, T) f32
            s = jnp.where(causal, s, -1e30)
            m = jnp.max(s, axis=-1, keepdims=True)
            p = jnp.exp(s - m)                              # unnormalized, f32
            denom = jnp.sum(p, axis=-1, keepdims=True)      # (T, 1)

            o_h = jnp.dot(p.astype(jnp.bfloat16), v_h,
                          preferred_element_type=jnp.float32)               # (T, DH)
            # normalize the small (T, DH) output instead of the (T, T) probs
            o_buf[:, h * DH:(h + 1) * DH] = o_h * pl.reciprocal(denom, approx=True)

        # single (T, D) @ (D, D) output projection
        proj = jnp.dot(o_buf[...].astype(jnp.bfloat16), w_ao_ref[li],
                       preferred_element_type=jnp.float32)
        x = x + proj + b_ao_ref[li]

        # ---- MLP sub-block ----
        mln = ln(x, ln2_g_ref[li], ln2_b_ref[li])
        hfc = jnp.dot(mln.astype(jnp.bfloat16), w_fc_ref[li],
                      preferred_element_type=jnp.float32) + b_fc_ref[li]    # (T, 4D) f32
        # GPT-2 "gelu_new" (kept in f32)
        hfc = 0.5 * hfc * (1.0 + jnp.tanh(0.7978845608028654 *
                                          (hfc + 0.044715 * hfc * hfc * hfc)))
        x = x + jnp.dot(hfc.astype(jnp.bfloat16), w_mo_ref[li],
                        preferred_element_type=jnp.float32) + b_mo_ref[li]

    xf = ln(x, lnf_g_ref[...], lnf_b_ref[...])
    # tied LM head: wte pre-transposed + vocab-padded in the wrapper -> plain dot,
    # lane-dense (T, 128) store.
    logits_ref[...] = jnp.dot(xf.astype(jnp.bfloat16), wte_t_ref[...],
                              preferred_element_type=jnp.float32)


# ---------------- one-time weight preparation (hoisted out of forward) ------
def prepare_params(params):
    blocks = params["blocks"]
    stack = lambda name: jnp.stack([blk[name] for blk in blocks])

    wte_t = jnp.zeros((D, VOCAB_PAD), jnp.float32)
    wte_t = wte_t.at[:, :VOCAB].set(params["wte"].T)

    kernel_args = (
        stack("ln1_g").reshape(L, 1, D),
        stack("ln1_b").reshape(L, 1, D),
        stack("w_qkv").astype(jnp.bfloat16),                 # (L, D, 3D)
        stack("b_qkv").reshape(L, 1, 3 * D),
        stack("w_ao").astype(jnp.bfloat16),                  # (L, D, D)
        stack("b_ao").reshape(L, 1, D),
        stack("ln2_g").reshape(L, 1, D),
        stack("ln2_b").reshape(L, 1, D),
        stack("w_fc").astype(jnp.bfloat16),                  # (L, D, 4D)
        stack("b_fc").reshape(L, 1, 4 * D),
        stack("w_mo").astype(jnp.bfloat16),                  # (L, 4D, D)
        stack("b_mo").reshape(L, 1, D),
        params["ln_f_g"].reshape(1, D),
        params["ln_f_b"].reshape(1, D),
        wte_t.astype(jnp.bfloat16),                          # (D, VOCAB_PAD)
    )
    return {"wte": params["wte"], "wpe": params["wpe"], "kernel_args": kernel_args}


# ---------------- wrapper ----------------
def gpt2lm_forward(prepared, ids):
    # ids: (B, T) int32 token ids
    # TODO(synk): fuse this gather via PrefetchScalarGridSpec + pl.Element row
    # gather once the table no longer fits VMEM; kept as wrapper glue here.
    pos = jnp.arange(T, dtype=jnp.int32)
    x = (jnp.take(prepared["wte"], ids, axis=0)
         + jnp.take(prepared["wpe"], pos, axis=0)[None])
    x = x.reshape(B * T, D).astype(jnp.float32)

    kernel_args = prepared["kernel_args"]

    def const_spec(a):
        nd = a.ndim
        return pl.BlockSpec(a.shape, lambda b, nd=nd: (0,) * nd)

    in_specs = [pl.BlockSpec((T, D), lambda b: (b, 0))]      # one batch element / step
    in_specs += [const_spec(a) for a in kernel_args]

    logits_pad = pl.pallas_call(
        _gpt2_fwd_kernel,
        out_shape=jax.ShapeDtypeStruct((B * T, VOCAB_PAD), jnp.float32),
        grid=(B,),
        in_specs=in_specs,
        out_specs=pl.BlockSpec((T, VOCAB_PAD), lambda b: (b, 0)),
        scratch_shapes=[pltpu.VMEM((T, D), jnp.float32)],    # per-head output slab
        compiler_params=pltpu.CompilerParams(dimension_semantics=("parallel",)),
    )(x, *kernel_args)

    return logits_pad[:, :VOCAB].reshape(B, T, VOCAB)


# ---------------- parameter init (deterministic, synthetic) ----------------
def init_params(key):
    ks = jax.random.split(key, 4 + L)
    std = 0.02
    params = {
        "wte": std * jax.random.normal(ks[0], (VOCAB, D), jnp.float32),
        "wpe": std * jax.random.normal(ks[1], (NPOS, D), jnp.float32),
        "ln_f_g": jnp.ones((D,), jnp.float32),
        "ln_f_b": jnp.zeros((D,), jnp.float32),
        "blocks": [],
    }
    for li in range(L):
        bk = jax.random.split(ks[4 + li], 4)
        params["blocks"].append({
            "ln1_g": jnp.ones((D,), jnp.float32),
            "ln1_b": jnp.zeros((D,), jnp.float32),
            "w_qkv": std * jax.random.normal(bk[0], (D, 3 * D), jnp.float32),
            "b_qkv": jnp.zeros((3 * D,), jnp.float32),
            "w_ao": std * jax.random.normal(bk[1], (D, D), jnp.float32),
            "b_ao": jnp.zeros((D,), jnp.float32),
            "ln2_g": jnp.ones((D,), jnp.float32),
            "ln2_b": jnp.zeros((D,), jnp.float32),
            "w_fc": std * jax.random.normal(bk[2], (D, 4 * D), jnp.float32),
            "b_fc": jnp.zeros((4 * D,), jnp.float32),
            "w_mo": std * jax.random.normal(bk[3], (4 * D, D), jnp.float32),
            "b_mo": jnp.zeros((D,), jnp.float32),
        })
    return params


# ---------------- pure-JAX f32 reference for a correctness check -----------
def gpt2lm_reference(params, ids):
    pos = jnp.arange(T, dtype=jnp.int32)
    x = (jnp.take(params["wte"], ids, axis=0)
         + jnp.take(params["wpe"], pos, axis=0)[None]).reshape(B * T, D)

    def ln(v, g, b):
        mu = jnp.mean(v, -1, keepdims=True)
        var = jnp.mean((v - mu) ** 2, -1, keepdims=True)
        return (v - mu) * lax.rsqrt(var + EPS) * g + b

    def gelu_new(v):
        return 0.5 * v * (1.0 + jnp.tanh(0.7978845608028654 * (v + 0.044715 * v ** 3)))

    for blk in params["blocks"]:
        a = ln(x, blk["ln1_g"], blk["ln1_b"])
        qkv = a @ blk["w_qkv"] + blk["b_qkv"]
        q, k, v = jnp.split(qkv, 3, axis=-1)
        q = q.reshape(B, T, H, DH).transpose(0, 2, 1, 3)
        k = k.reshape(B, T, H, DH).transpose(0, 2, 1, 3)
        v = v.reshape(B, T, H, DH).transpose(0, 2, 1, 3)
        s = jnp.einsum("bhqd,bhkd->bhqk", q, k) / math.sqrt(DH)
        mask = jnp.tril(jnp.ones((T, T), bool))
        s = jnp.where(mask, s, -1e30)
        p = jax.nn.softmax(s, axis=-1)
        o = jnp.einsum("bhqk,bhkd->bhqd", p, v).transpose(0, 2, 1, 3).reshape(B * T, D)
        x = x + (o @ blk["w_ao"] + blk["b_ao"])
        m = ln(x, blk["ln2_g"], blk["ln2_b"])
        x = x + (gelu_new(m @ blk["w_fc"] + blk["b_fc"]) @ blk["w_mo"] + blk["b_mo"])

    x = ln(x, params["ln_f_g"], params["ln_f_b"])
    return (x @ params["wte"].T).reshape(B, T, VOCAB)


if __name__ == "__main__":
    key = jax.random.PRNGKey(0)
    k_param, k_ids = jax.random.split(key)
    params = init_params(k_param)
    ids = jax.random.randint(k_ids, (B, T), 0, VOCAB, dtype=jnp.int32)

    prepared = prepare_params(params)          # one-time: stacks / casts / pads weights

    logits = jax.jit(gpt2lm_forward)(prepared, ids)
    logits = jax.block_until_ready(logits)

    ref = gpt2lm_reference(params, ids)
    assert logits.shape == (B, T, VOCAB)
    # Tolerance reflects bf16 MXU operands vs the f32 reference.
    assert jnp.allclose(logits, ref, rtol=1e-2, atol=1e-2), (
        float(jnp.max(jnp.abs(logits - ref))))

    print("KERNEL_OK")
</pallas_src>

<mosaic_0001>
module attributes {stable_mosaic.version = 11 : i64} {
  func.func @_gpt2_fwd_kernel(%arg0: i32, %arg1: memref<8x32xf32, #tpu.memory_space<vmem>>, %arg2: memref<2x1x32xf32, #tpu.memory_space<vmem>>, %arg3: memref<2x1x32xf32, #tpu.memory_space<vmem>>, %arg4: memref<2x32x96xbf16, #tpu.memory_space<vmem>>, %arg5: memref<2x1x96xf32, #tpu.memory_space<vmem>>, %arg6: memref<2x32x32xbf16, #tpu.memory_space<vmem>>, %arg7: memref<2x1x32xf32, #tpu.memory_space<vmem>>, %arg8: memref<2x1x32xf32, #tpu.memory_space<vmem>>, %arg9: memref<2x1x32xf32, #tpu.memory_space<vmem>>, %arg10: memref<2x32x128xbf16, #tpu.memory_space<vmem>>, %arg11: memref<2x1x128xf32, #tpu.memory_space<vmem>>, %arg12: memref<2x128x32xbf16, #tpu.memory_space<vmem>>, %arg13: memref<2x1x32xf32, #tpu.memory_space<vmem>>, %arg14: memref<1x32xf32, #tpu.memory_space<vmem>>, %arg15: memref<1x32xf32, #tpu.memory_space<vmem>>, %arg16: memref<32x128xbf16, #tpu.memory_space<vmem>>, %arg17: memref<8x128xf32, #tpu.memory_space<vmem>>, %arg18: memref<8x32xf32, #tpu.memory_space<vmem>>) attributes {dimension_semantics = [#tpu.dimension_semantics<parallel>], iteration_bounds = array<i64: 2>, scalar_prefetch = 0 : i64, scratch_operands = 1 : i64, tpu.core_type = #tpu.core_type<tc>, window_params = [{transform_indices = @transform_0, window_bounds = array<i64: 8, 32>}, {pipeline_mode = #tpu.pipeline_mode<synchronous>, transform_indices = @transform_1, window_bounds = array<i64: 2, 1, 32>}, {pipeline_mode = #tpu.pipeline_mode<synchronous>, transform_indices = @transform_2, window_bounds = array<i64: 2, 1, 32>}, {pipeline_mode = #tpu.pipeline_mode<synchronous>, transform_indices = @transform_3, window_bounds = array<i64: 2, 32, 96>}, {pipeline_mode = #tpu.pipeline_mode<synchronous>, transform_indices = @transform_4, window_bounds = array<i64: 2, 1, 96>}, {pipeline_mode = #tpu.pipeline_mode<synchronous>, transform_indices = @transform_5, window_bounds = array<i64: 2, 32, 32>}, {pipeline_mode = #tpu.pipeline_mode<synchronous>, transform_indices = @transform_6, window_bounds = array<i64: 2, 1, 32>}, {pipeline_mode = #tpu.pipeline_mode<synchronous>, transform_indices = @transform_7, window_bounds = array<i64: 2, 1, 32>}, {pipeline_mode = #tpu.pipeline_mode<synchronous>, transform_indices = @transform_8, window_bounds = array<i64: 2, 1, 32>}, {pipeline_mode = #tpu.pipeline_mode<synchronous>, transform_indices = @transform_9, window_bounds = array<i64: 2, 32, 128>}, {pipeline_mode = #tpu.pipeline_mode<synchronous>, transform_indices = @transform_10, window_bounds = array<i64: 2, 1, 128>}, {pipeline_mode = #tpu.pipeline_mode<synchronous>, transform_indices = @transform_11, window_bounds = array<i64: 2, 128, 32>}, {pipeline_mode = #tpu.pipeline_mode<synchronous>, transform_indices = @transform_12, window_bounds = array<i64: 2, 1, 32>}, {pipeline_mode = #tpu.pipeline_mode<synchronous>, transform_indices = @transform_13, window_bounds = array<i64: 1, 32>}, {pipeline_mode = #tpu.pipeline_mode<synchronous>, transform_indices = @transform_14, window_bounds = array<i64: 1, 32>}, {pipeline_mode = #tpu.pipeline_mode<synchronous>, transform_indices = @transform_15, window_bounds = array<i64: 32, 128>}, {transform_indices = @transform_16, window_bounds = array<i64: 8, 128>}]} {
    %c0 = arith.constant 0 : index
    %c0_0 = arith.constant 0 : index
    %0 = vector.load %arg1[%c0, %c0_0] : memref<8x32xf32, #tpu.memory_space<vmem>>, vector<8x32xf32>
    %1 = tpu.iota {dimensions = array<i32: 0>} : vector<8x8xi32>
    %2 = tpu.iota {dimensions = array<i32: 1>} : vector<8x8xi32>
    %3 = arith.cmpi sle, %2, %1 : vector<8x8xi32>
    %c0_1 = arith.constant 0 : index
    %c0_2 = arith.constant 0 : index
    %c0_3 = arith.constant 0 : index
    %4 = vector.load %arg2[%c0_1, %c0_2, %c0_3] : memref<2x1x32xf32, #tpu.memory_space<vmem>>, vector<1x1x32xf32>
    %5 = vector.shape_cast %4 : vector<1x1x32xf32> to vector<1x32xf32>
    %c0_4 = arith.constant 0 : index
    %c0_5 = arith.constant 0 : index
    %c0_6 = arith.constant 0 : index
    %6 = vector.load %arg3[%c0_4, %c0_5, %c0_6] : memref<2x1x32xf32, #tpu.memory_space<vmem>>, vector<1x1x32xf32>
    %7 = vector.shape_cast %6 : vector<1x1x32xf32> to vector<1x32xf32>
    %cst = arith.constant dense<0.000000e+00> : vector<8xf32>
    %8 = vector.multi_reduction <add>, %0, %cst [1] : vector<8x32xf32> to vector<8xf32>
    %9 = vector.shape_cast %8 : vector<8xf32> to vector<8x1xf32>
    %cst_7 = arith.constant 3.200000e+01 : f32
    %10 = vector.broadcast %cst_7 : f32 to vector<8x1xf32>
    %11 = arith.divf %9, %10 : vector<8x1xf32>
    %12 = vector.broadcast %11 : vector<8x1xf32> to vector<8x32xf32>
    %13 = arith.subf %0, %12 : vector<8x32xf32>
    %14 = arith.mulf %13, %13 : vector<8x32xf32>
    %cst_8 = arith.constant dense<0.000000e+00> : vector<8xf32>
    %15 = vector.multi_reduction <add>, %14, %cst_8 [1] : vector<8x32xf32> to vector<8xf32>
    %16 = vector.shape_cast %15 : vector<8xf32> to vector<8x1xf32>
    %cst_9 = arith.constant 3.200000e+01 : f32
    %17 = vector.broadcast %cst_9 : f32 to vector<8x1xf32>
    %18 = arith.divf %16, %17 : vector<8x1xf32>
    %19 = vector.broadcast %11 : vector<8x1xf32> to vector<8x32xf32>
    %20 = arith.subf %0, %19 : vector<8x32xf32>
    %cst_10 = arith.constant 9.99999974E-6 : f32
    %21 = vector.broadcast %cst_10 : f32 to vector<8x1xf32>
    %22 = arith.addf %18, %21 : vector<8x1xf32>
    %23 = math.rsqrt %22 : vector<8x1xf32>
    %24 = vector.broadcast %23 : vector<8x1xf32> to vector<8x32xf32>
    %25 = arith.mulf %20, %24 : vector<8x32xf32>
    %26 = vector.broadcast %5 : vector<1x32xf32> to vector<8x32xf32>
    %27 = arith.mulf %25, %26 : vector<8x32xf32>
    %28 = vector.broadcast %7 : vector<1x32xf32> to vector<8x32xf32>
    %29 = arith.addf %27, %28 : vector<8x32xf32>
    %30 = arith.truncf %29 : vector<8x32xf32> to vector<8x32xbf16>
    %c0_11 = arith.constant 0 : index
    %c0_12 = arith.constant 0 : index
    %c0_13 = arith.constant 0 : index
    %31 = vector.load %arg4[%c0_11, %c0_12, %c0_13] : memref<2x32x96xbf16, #tpu.memory_space<vmem>>, vector<1x32x96xbf16>
    %32 = vector.shape_cast %31 : vector<1x32x96xbf16> to vector<32x96xbf16>
    %cst_14 = arith.constant dense<0.000000e+00> : vector<8x96xf32>
    %33 = tpu.matmul %30, %32, %cst_14 {dimension_numbers = #tpu.dot_dimension_numbers<[1], [0], [0], [1], [0, 0, 1, 1], [], []>} : vector<8x32xbf16>, vector<32x96xbf16>, vector<8x96xf32> -> vector<8x96xf32>
    %c0_15 = arith.constant 0 : index
    %c0_16 = arith.constant 0 : index
    %c0_17 = arith.constant 0 : index
    %34 = vector.load %arg5[%c0_15, %c0_16, %c0_17] : memref<2x1x96xf32, #tpu.memory_space<vmem>>, vector<1x1x96xf32>
    %35 = vector.shape_cast %34 : vector<1x1x96xf32> to vector<1x96xf32>
    %36 = vector.broadcast %35 : vector<1x96xf32> to vector<8x96xf32>
    %37 = arith.addf %33, %36 : vector<8x96xf32>
    %38 = vector.extract_strided_slice %37 {offsets = [0, 0], sizes = [8, 8], strides = [1, 1]} : vector<8x96xf32> to vector<8x8xf32>
    %39 = arith.truncf %38 : vector<8x8xf32> to vector<8x8xbf16>
    %40 = vector.extract_strided_slice %37 {offsets = [0, 32], sizes = [8, 8], strides = [1, 1]} : vector<8x96xf32> to vector<8x8xf32>
    %41 = arith.truncf %40 : vector<8x8xf32> to vector<8x8xbf16>
    %42 = vector.extract_strided_slice %37 {offsets = [0, 64], sizes = [8, 8], strides = [1, 1]} : vector<8x96xf32> to vector<8x8xf32>
    %43 = arith.truncf %42 : vector<8x8xf32> to vector<8x8xbf16>
    %cst_18 = arith.constant dense<0.000000e+00> : vector<8x8xf32>
    %44 = tpu.matmul %39, %41, %cst_18 {dimension_numbers = #tpu.dot_dimension_numbers<[1], [1], [0], [0], [0, 0, 1, 0], [], []>} : vector<8x8xbf16>, vector<8x8xbf16>, vector<8x8xf32> -> vector<8x8xf32>
    %cst_19 = arith.constant 0.353553385 : f32
    %45 = vector.broadcast %cst_19 : f32 to vector<8x8xf32>
    %46 = arith.mulf %44, %45 : vector<8x8xf32>
    %cst_20 = arith.constant -1.000000e+30 : f32
    %47 = vector.broadcast %cst_20 : f32 to vector<8x8xf32>
    %48 = arith.select %3, %46, %47 : vector<8x8xi1>, vector<8x8xf32>
    %cst_21 = arith.constant dense<0xFF800000> : vector<8xf32>
    %49 = vector.multi_reduction <maximumf>, %48, %cst_21 [1] : vector<8x8xf32> to vector<8xf32>
    %50 = vector.shape_cast %49 : vector<8xf32> to vector<8x1xf32>
    %51 = vector.broadcast %50 : vector<8x1xf32> to vector<8x8xf32>
    %52 = arith.subf %48, %51 : vector<8x8xf32>
    %53 = math.exp %52 : vector<8x8xf32>
    %cst_22 = arith.constant dense<0.000000e+00> : vector<8xf32>
    %54 = vector.multi_reduction <add>, %53, %cst_22 [1] : vector<8x8xf32> to vector<8xf32>
    %55 = vector.shape_cast %54 : vector<8xf32> to vector<8x1xf32>
    %56 = arith.truncf %53 : vector<8x8xf32> to vector<8x8xbf16>
    %cst_23 = arith.constant dense<0.000000e+00> : vector<8x8xf32>
    %57 = tpu.matmul %56, %43, %cst_23 {dimension_numbers = #tpu.dot_dimension_numbers<[1], [0], [0], [1], [0, 0, 1, 1], [], []>} : vector<8x8xbf16>, vector<8x8xbf16>, vector<8x8xf32> -> vector<8x8xf32>
    %58 = tpu.reciprocal %55 {approx = true} : vector<8x1xf32> -> vector<8x1xf32>
    %59 = vector.broadcast %58 : vector<8x1xf32> to vector<8x8xf32>
    %60 = arith.mulf %57, %59 : vector<8x8xf32>
    %c0_24 = arith.constant 0 : index
    %c0_25 = arith.constant 0 : index
    %61 = vector.load %arg18[%c0_24, %c0_25] : memref<8x32xf32, #tpu.memory_space<vmem>>, vector<8x8xf32>
    tpu.vector_store %arg18[%c0_24, %c0_25], %60 {strides = array<i32>} : memref<8x32xf32, #tpu.memory_space<vmem>>, vector<8x8xf32>,
    %62 = vector.extract_strided_slice %37 {offsets = [0, 8], sizes = [8, 8], strides = [1, 1]} : vector<8x96xf32> to vector<8x8xf32>
    %63 = arith.truncf %62 : vector<8x8xf32> to vector<8x8xbf16>
    %64 = vector.extract_strided_slice %37 {offsets = [0, 40], sizes = [8, 8], strides = [1, 1]} : vector<8x96xf32> to vector<8x8xf32>
    %65 = arith.truncf %64 : vector<8x8xf32> to vector<8x8xbf16>
    %66 = vector.extract_strided_slice %37 {offsets = [0, 72], sizes = [8, 8], strides = [1, 1]} : vector<8x96xf32> to vector<8x8xf32>
    %67 = arith.truncf %66 : vector<8x8xf32> to vector<8x8xbf16>
    %cst_26 = arith.constant dense<0.000000e+00> : vector<8x8xf32>
    %68 = tpu.matmul %63, %65, %cst_26 {dimension_numbers = #tpu.dot_dimension_numbers<[1], [1], [0], [0], [0, 0, 1, 0], [], []>} : vector<8x8xbf16>, vector<8x8xbf16>, vector<8x8xf32> -> vector<8x8xf32>
    %cst_27 = arith.constant 0.353553385 : f32
    %69 = vector.broadcast %cst_27 : f32 to vector<8x8xf32>
    %70 = arith.mulf %68, %69 : vector<8x8xf32>
    %cst_28 = arith.constant -1.000000e+30 : f32
    %71 = vector.broadcast %cst_28 : f32 to vector<8x8xf32>
    %72 = arith.select %3, %70, %71 : vector<8x8xi1>, vector<8x8xf32>
    %cst_29 = arith.constant dense<0xFF800000> : vector<8xf32>
    %73 = vector.multi_reduction <maximumf>, %72, %cst_29 [1] : vector<8x8xf32> to vector<8xf32>
    %74 = vector.shape_cast %73 : vector<8xf32> to vector<8x1xf32>
    %75 = vector.broadcast %74 : vector<8x1xf32> to vector<8x8xf32>
    %76 = arith.subf %72, %75 : vector<8x8xf32>
    %77 = math.exp %76 : vector<8x8xf32>
    %cst_30 = arith.constant dense<0.000000e+00> : vector<8xf32>
    %78 = vector.multi_reduction <add>, %77, %cst_30 [1] : vector<8x8xf32> to vector<8xf32>
    %79 = vector.shape_cast %78 : vector<8xf32> to vector<8x1xf32>
    %80 = arith.truncf %77 : vector<8x8xf32> to vector<8x8xbf16>
    %cst_31 = arith.constant dense<0.000000e+00> : vector<8x8xf32>
    %81 = tpu.matmul %80, %67, %cst_31 {dimension_numbers = #tpu.dot_dimension_numbers<[1], [0], [0], [1], [0, 0, 1, 1], [], []>} : vector<8x8xbf16>, vector<8x8xbf16>, vector<8x8xf32> -> vector<8x8xf32>
    %82 = tpu.reciprocal %79 {approx = true} : vector<8x1xf32> -> vector<8x1xf32>
    %83 = vector.broadcast %82 : vector<8x1xf32> to vector<8x8xf32>
    %84 = arith.mulf %81, %83 : vector<8x8xf32>
    %c0_32 = arith.constant 0 : index
    %c8 = arith.constant 8 : index
    %85 = vector.load %arg18[%c0_32, %c8] : memref<8x32xf32, #tpu.memory_space<vmem>>, vector<8x8xf32>
    tpu.vector_store %arg18[%c0_32, %c8], %84 {strides = array<i32>} : memref<8x32xf32, #tpu.memory_space<vmem>>, vector<8x8xf32>,
    %86 = vector.extract_strided_slice %37 {offsets = [0, 16], sizes = [8, 8], strides = [1, 1]} : vector<8x96xf32> to vector<8x8xf32>
    %87 = arith.truncf %86 : vector<8x8xf32> to vector<8x8xbf16>
    %88 = vector.extract_strided_slice %37 {offsets = [0, 48], sizes = [8, 8], strides = [1, 1]} : vector<8x96xf32> to vector<8x8xf32>
    %89 = arith.truncf %88 : vector<8x8xf32> to vector<8x8xbf16>
    %90 = vector.extract_strided_slice %37 {offsets = [0, 80], sizes = [8, 8], strides = [1, 1]} : vector<8x96xf32> to vector<8x8xf32>
    %91 = arith.truncf %90 : vector<8x8xf32> to vector<8x8xbf16>
    %cst_33 = arith.constant dense<0.000000e+00> : vector<8x8xf32>
    %92 = tpu.matmul %87, %89, %cst_33 {dimension_numbers = #tpu.dot_dimension_numbers<[1], [1], [0], [0], [0, 0, 1, 0], [], []>} : vector<8x8xbf16>, vector<8x8xbf16>, vector<8x8xf32> -> vector<8x8xf32>
    %cst_34 = arith.constant 0.353553385 : f32
    %93 = vector.broadcast %cst_34 : f32 to vector<8x8xf32>
    %94 = arith.mulf %92, %93 : vector<8x8xf32>
    %cst_35 = arith.constant -1.000000e+30 : f32
    %95 = vector.broadcast %cst_35 : f32 to vector<8x8xf32>
    %96 = arith.select %3, %94, %95 : vector<8x8xi1>, vector<8x8xf32>
    %cst_36 = arith.constant dense<0xFF800000> : vector<8xf32>
    %97 = vector.multi_reduction <maximumf>, %96, %cst_36 [1] : vector<8x8xf32> to vector<8xf32>
    %98 = vector.shape_cast %97 : vector<8xf32> to vector<8x1xf32>
    %99 = vector.broadcast %98 : vector<8x1xf32> to vector<8x8xf32>
    %100 = arith.subf %96, %99 : vector<8x8xf32>
    %101 = math.exp %100 : vector<8x8xf32>
    %cst_37 = arith.constant dense<0.000000e+00> : vector<8xf32>
    %102 = vector.multi_reduction <add>, %101, %cst_37 [1] : vector<8x8xf32> to vector<8xf32>
    %103 = vector.shape_cast %102 : vector<8xf32> to vector<8x1xf32>
    %104 = arith.truncf %101 : vector<8x8xf32> to vector<8x8xbf16>
    %cst_38 = arith.constant dense<0.000000e+00> : vector<8x8xf32>
    %105 = tpu.matmul %104, %91, %cst_38 {dimension_numbers = #tpu.dot_dimension_numbers<[1], [0], [0], [1], [0, 0, 1, 1], [], []>} : vector<8x8xbf16>, vector<8x8xbf16>, vector<8x8xf32> -> vector<8x8xf32>
    %106 = tpu.reciprocal %103 {approx = true} : vector<8x1xf32> -> vector<8x1xf32>
    %107 = vector.broadcast %106 : vector<8x1xf32> to vector<8x8xf32>
    %108 = arith.mulf %105, %107 : vector<8x8xf32>
    %c0_39 = arith.constant 0 : index
    %c16 = arith.constant 16 : index
    %109 = vector.load %arg18[%c0_39, %c16] : memref<8x32xf32, #tpu.memory_space<vmem>>, vector<8x8xf32>
    tpu.vector_store %arg18[%c0_39, %c16], %108 {strides = array<i32>} : memref<8x32xf32, #tpu.memory_space<vmem>>, vector<8x8xf32>,
    %110 = vector.extract_strided_slice %37 {offsets = [0, 24], sizes = [8, 8], strides = [1, 1]} : vector<8x96xf32> to vector<8x8xf32>
    %111 = arith.truncf %110 : vector<8x8xf32> to vector<8x8xbf16>
    %112 = vector.extract_strided_slice %37 {offsets = [0, 56], sizes = [8, 8], strides = [1, 1]} : vector<8x96xf32> to vector<8x8xf32>
    %113 = arith.truncf %112 : vector<8x8xf32> to vector<8x8xbf16>
    %114 = vector.extract_strided_slice %37 {offsets = [0, 88], sizes = [8, 8], strides = [1, 1]} : vector<8x96xf32> to vector<8x8xf32>
    %115 = arith.truncf %114 : vector<8x8xf32> to vector<8x8xbf16>
    %cst_40 = arith.constant dense<0.000000e+00> : vector<8x8xf32>
    %116 = tpu.matmul %111, %113, %cst_40 {dimension_numbers = #tpu.dot_dimension_numbers<[1], [1], [0], [0], [0, 0, 1, 0], [], []>} : vector<8x8xbf16>, vector<8x8xbf16>, vector<8x8xf32> -> vector<8x8xf32>
    %cst_41 = arith.constant 0.353553385 : f32
    %117 = vector.broadcast %cst_41 : f32 to vector<8x8xf32>
    %118 = arith.mulf %116, %117 : vector<8x8xf32>
    %cst_42 = arith.constant -1.000000e+30 : f32
    %119 = vector.broadcast %cst_42 : f32 to vector<8x8xf32>
    %120 = arith.select %3, %118, %119 : vector<8x8xi1>, vector<8x8xf32>
    %cst_43 = arith.constant dense<0xFF800000> : vector<8xf32>
    %121 = vector.multi_reduction <maximumf>, %120, %cst_43 [1] : vector<8x8xf32> to vector<8xf32>
    %122 = vector.shape_cast %121 : vector<8xf32> to vector<8x1xf32>
    %123 = vector.broadcast %122 : vector<8x1xf32> to vector<8x8xf32>
    %124 = arith.subf %120, %123 : vector<8x8xf32>
    %125 = math.exp %124 : vector<8x8xf32>
    %cst_44 = arith.constant dense<0.000000e+00> : vector<8xf32>
    %126 = vector.multi_reduction <add>, %125, %cst_44 [1] : vector<8x8xf32> to vector<8xf32>
    %127 = vector.shape_cast %126 : vector<8xf32> to vector<8x1xf32>
    %128 = arith.truncf %125 : vector<8x8xf32> to vector<8x8xbf16>
    %cst_45 = arith.constant dense<0.000000e+00> : vector<8x8xf32>
    %129 = tpu.matmul %128, %115, %cst_45 {dimension_numbers = #tpu.dot_dimension_numbers<[1], [0], [0], [1], [0, 0, 1, 1], [], []>} : vector<8x8xbf16>, vector<8x8xbf16>, vector<8x8xf32> -> vector<8x8xf32>
    %130 = tpu.reciprocal %127 {approx = true} : vector<8x1xf32> -> vector<8x1xf32>
    %131 = vector.broadcast %130 : vector<8x1xf32> to vector<8x8xf32>
    %132 = arith.mulf %129, %131 : vector<8x8xf32>
    %c0_46 = arith.constant 0 : index
    %c24 = arith.constant 24 : index
    %133 = vector.load %arg18[%c0_46, %c24] : memref<8x32xf32, #tpu.memory_space<vmem>>, vector<8x8xf32>
    tpu.vector_store %arg18[%c0_46, %c24], %132 {strides = array<i32>} : memref<8x32xf32, #tpu.memory_space<vmem>>, vector<8x8xf32>,
    %c0_47 = arith.constant 0 : index
    %c0_48 = arith.constant 0 : index
    %134 = vector.load %arg18[%c0_47, %c0_48] : memref<8x32xf32, #tpu.memory_space<vmem>>, vector<8x32xf32>
    %135 = arith.truncf %134 : vector<8x32xf32> to vector<8x32xbf16>
    %c0_49 = arith.constant 0 : index
    %c0_50 = arith.constant 0 : index
    %c0_51 = arith.constant 0 : index
    %136 = vector.load %arg6[%c0_49, %c0_50, %c0_51] : memref<2x32x32xbf16, #tpu.memory_space<vmem>>, vector<1x32x32xbf16>
    %137 = vector.shape_cast %136 : vector<1x32x32xbf16> to vector<32x32xbf16>
    %cst_52 = arith.constant dense<0.000000e+00> : vector<8x32xf32>
    %138 = tpu.matmul %135, %137, %cst_52 {dimension_numbers = #tpu.dot_dimension_numbers<[1], [0], [0], [1], [0, 0, 1, 1], [], []>} : vector<8x32xbf16>, vector<32x32xbf16>, vector<8x32xf32> -> vector<8x32xf32>
    %139 = arith.addf %0, %138 : vector<8x32xf32>
    %c0_53 = arith.constant 0 : index
    %c0_54 = arith.constant 0 : index
    %c0_55 = arith.constant 0 : index
    %140 = vector.load %arg7[%c0_53, %c0_54, %c0_55] : memref<2x1x32xf32, #tpu.memory_space<vmem>>, vector<1x1x32xf32>
    %141 = vector.shape_cast %140 : vector<1x1x32xf32> to vector<1x32xf32>
    %142 = vector.broadcast %141 : vector<1x32xf32> to vector<8x32xf32>
    %143 = arith.addf %139, %142 : vector<8x32xf32>
    %c0_56 = arith.constant 0 : index
    %c0_57 = arith.constant 0 : index
    %c0_58 = arith.constant 0 : index
    %144 = vector.load %arg8[%c0_56, %c0_57, %c0_58] : memref<2x1x32xf32, #tpu.memory_space<vmem>>, vector<1x1x32xf32>
    %145 = vector.shape_cast %144 : vector<1x1x32xf32> to vector<1x32xf32>
    %c0_59 = arith.constant 0 : index
    %c0_60 = arith.constant 0 : index
    %c0_61 = arith.constant 0 : index
    %146 = vector.load %arg9[%c0_59, %c0_60, %c0_61] : memref<2x1x32xf32, #tpu.memory_space<vmem>>, vector<1x1x32xf32>
    %147 = vector.shape_cast %146 : vector<1x1x32xf32> to vector<1x32xf32>
    %cst_62 = arith.constant dense<0.000000e+00> : vector<8xf32>
    %148 = vector.multi_reduction <add>, %143, %cst_62 [1] : vector<8x32xf32> to vector<8xf32>
    %149 = vector.shape_cast %148 : vector<8xf32> to vector<8x1xf32>
    %cst_63 = arith.constant 3.200000e+01 : f32
    %150 = vector.broadcast %cst_63 : f32 to vector<8x1xf32>
    %151 = arith.divf %149, %150 : vector<8x1xf32>
    %152 = vector.broadcast %151 : vector<8x1xf32> to vector<8x32xf32>
    %153 = arith.subf %143, %152 : vector<8x32xf32>
    %154 = arith.mulf %153, %153 : vector<8x32xf32>
    %cst_64 = arith.constant dense<0.000000e+00> : vector<8xf32>
    %155 = vector.multi_reduction <add>, %154, %cst_64 [1] : vector<8x32xf32> to vector<8xf32>
    %156 = vector.shape_cast %155 : vector<8xf32> to vector<8x1xf32>
    %cst_65 = arith.constant 3.200000e+01 : f32
    %157 = vector.broadcast %cst_65 : f32 to vector<8x1xf32>
    %158 = arith.divf %156, %157 : vector<8x1xf32>
    %159 = vector.broadcast %151 : vector<8x1xf32> to vector<8x32xf32>
    %160 = arith.subf %143, %159 : vector<8x32xf32>
    %cst_66 = arith.constant 9.99999974E-6 : f32
    %161 = vector.broadcast %cst_66 : f32 to vector<8x1xf32>
    %162 = arith.addf %158, %161 : vector<8x1xf32>
    %163 = math.rsqrt %162 : vector<8x1xf32>
    %164 = vector.broadcast %163 : vector<8x1xf32> to vector<8x32xf32>
    %165 = arith.mulf %160, %164 : vector<8x32xf32>
    %166 = vector.broadcast %145 : vector<1x32xf32> to vector<8x32xf32>
    %167 = arith.mulf %165, %166 : vector<8x32xf32>
    %168 = vector.broadcast %147 : vector<1x32xf32> to vector<8x32xf32>
    %169 = arith.addf %167, %168 : vector<8x32xf32>
    %170 = arith.truncf %169 : vector<8x32xf32> to vector<8x32xbf16>
    %c0_67 = arith.constant 0 : index
    %c0_68 = arith.constant 0 : index
    %c0_69 = arith.constant 0 : index
    %171 = vector.load %arg10[%c0_67, %c0_68, %c0_69] : memref<2x32x128xbf16, #tpu.memory_space<vmem>>, vector<1x32x128xbf16>
    %172 = vector.shape_cast %171 : vector<1x32x128xbf16> to vector<32x128xbf16>
    %cst_70 = arith.constant dense<0.000000e+00> : vector<8x128xf32>
    %173 = tpu.matmul %170, %172, %cst_70 {dimension_numbers = #tpu.dot_dimension_numbers<[1], [0], [0], [1], [0, 0, 1, 1], [], []>} : vector<8x32xbf16>, vector<32x128xbf16>, vector<8x128xf32> -> vector<8x128xf32>
    %c0_71 = arith.constant 0 : index
    %c0_72 = arith.constant 0 : index
    %c0_73 = arith.constant 0 : index
    %174 = vector.load %arg11[%c0_71, %c0_72, %c0_73] : memref<2x1x128xf32, #tpu.memory_space<vmem>>, vector<1x1x128xf32>
    %175 = vector.shape_cast %174 : vector<1x1x128xf32> to vector<1x128xf32>
    %176 = vector.broadcast %175 : vector<1x128xf32> to vector<8x128xf32>
    %177 = arith.addf %173, %176 : vector<8x128xf32>
    %cst_74 = arith.constant 5.000000e-01 : f32
    %178 = vector.broadcast %cst_74 : f32 to vector<8x128xf32>
    %179 = arith.mulf %178, %177 : vector<8x128xf32>
    %cst_75 = arith.constant 4.471500e-02 : f32
    %180 = vector.broadcast %cst_75 : f32 to vector<8x128xf32>
    %181 = arith.mulf %180, %177 : vector<8x128xf32>
    %182 = arith.mulf %181, %177 : vector<8x128xf32>
    %183 = arith.mulf %182, %177 : vector<8x128xf32>
    %184 = arith.addf %177, %183 : vector<8x128xf32>
    %cst_76 = arith.constant 0.797884583 : f32
    %185 = vector.broadcast %cst_76 : f32 to vector<8x128xf32>
    %186 = arith.mulf %185, %184 : vector<8x128xf32>
    %187 = math.tanh %186 : vector<8x128xf32>
    %cst_77 = arith.constant 1.000000e+00 : f32
    %188 = vector.broadcast %cst_77 : f32 to vector<8x128xf32>
    %189 = arith.addf %188, %187 : vector<8x128xf32>
    %190 = arith.mulf %179, %189 : vector<8x128xf32>
    %191 = arith.truncf %190 : vector<8x128xf32> to vector<8x128xbf16>
    %c0_78 = arith.constant 0 : index
    %c0_79 = arith.constant 0 : index
    %c0_80 = arith.constant 0 : index
    %192 = vector.load %arg12[%c0_78, %c0_79, %c0_80] : memref<2x128x32xbf16, #tpu.memory_space<vmem>>, vector<1x128x32xbf16>
    %193 = vector.shape_cast %192 : vector<1x128x32xbf16> to vector<128x32xbf16>
    %cst_81 = arith.constant dense<0.000000e+00> : vector<8x32xf32>
    %194 = tpu.matmul %191, %193, %cst_81 {dimension_numbers = #tpu.dot_dimension_numbers<[1], [0], [0], [1], [0, 0, 1, 1], [], []>} : vector<8x128xbf16>, vector<128x32xbf16>, vector<8x32xf32> -> vector<8x32xf32>
    %195 = arith.addf %143, %194 : vector<8x32xf32>
    %c0_82 = arith.constant 0 : index
    %c0_83 = arith.constant 0 : index
    %c0_84 = arith.constant 0 : index
    %196 = vector.load %arg13[%c0_82, %c0_83, %c0_84] : memref<2x1x32xf32, #tpu.memory_space<vmem>>, vector<1x1x32xf32>
    %197 = vector.shape_cast %196 : vector<1x1x32xf32> to vector<1x32xf32>
    %198 = vector.broadcast %197 : vector<1x32xf32> to vector<8x32xf32>
    %199 = arith.addf %195, %198 : vector<8x32xf32>
    %c1 = arith.constant 1 : index
    %c0_85 = arith.constant 0 : index
    %c0_86 = arith.constant 0 : index
    %200 = vector.load %arg2[%c1, %c0_85, %c0_86] : memref<2x1x32xf32, #tpu.memory_space<vmem>>, vector<1x1x32xf32>
    %201 = vector.shape_cast %200 : vector<1x1x32xf32> to vector<1x32xf32>
    %c1_87 = arith.constant 1 : index
    %c0_88 = arith.constant 0 : index
    %c0_89 = arith.constant 0 : index
    %202 = vector.load %arg3[%c1_87, %c0_88, %c0_89] : memref<2x1x32xf32, #tpu.memory_space<vmem>>, vector<1x1x32xf32>
    %203 = vector.shape_cast %202 : vector<1x1x32xf32> to vector<1x32xf32>
    %cst_90 = arith.constant dense<0.000000e+00> : vector<8xf32>
    %204 = vector.multi_reduction <add>, %199, %cst_90 [1] : vector<8x32xf32> to vector<8xf32>
    %205 = vector.shape_cast %204 : vector<8xf32> to vector<8x1xf32>
    %cst_91 = arith.constant 3.200000e+01 : f32
    %206 = vector.broadcast %cst_91 : f32 to vector<8x1xf32>
    %207 = arith.divf %205, %206 : vector<8x1xf32>
    %208 = vector.broadcast %207 : vector<8x1xf32> to vector<8x32xf32>
    %209 = arith.subf %199, %208 : vector<8x32xf32>
    %210 = arith.mulf %209, %209 : vector<8x32xf32>
    %cst_92 = arith.constant dense<0.000000e+00> : vector<8xf32>
    %211 = vector.multi_reduction <add>, %210, %cst_92 [1] : vector<8x32xf32> to vector<8xf32>
    %212 = vector.shape_cast %211 : vector<8xf32> to vector<8x1xf32>
    %cst_93 = arith.constant 3.200000e+01 : f32
    %213 = vector.broadcast %cst_93 : f32 to vector<8x1xf32>
    %214 = arith.divf %212, %213 : vector<8x1xf32>
    %215 = vector.broadcast %207 : vector<8x1xf32> to vector<8x32xf32>
    %216 = arith.subf %199, %215 : vector<8x32xf32>
    %cst_94 = arith.constant 9.99999974E-6 : f32
    %217 = vector.broadcast %cst_94 : f32 to vector<8x1xf32>
    %218 = arith.addf %214, %217 : vector<8x1xf32>
    %219 = math.rsqrt %218 : vector<8x1xf32>
    %220 = vector.broadcast %219 : vector<8x1xf32> to vector<8x32xf32>
    %221 = arith.mulf %216, %220 : vector<8x32xf32>
    %222 = vector.broadcast %201 : vector<1x32xf32> to vector<8x32xf32>
    %223 = arith.mulf %221, %222 : vector<8x32xf32>
    %224 = vector.broadcast %203 : vector<1x32xf32> to vector<8x32xf32>
    %225 = arith.addf %223, %224 : vector<8x32xf32>
    %226 = arith.truncf %225 : vector<8x32xf32> to vector<8x32xbf16>
    %c1_95 = arith.constant 1 : index
    %c0_96 = arith.constant 0 : index
    %c0_97 = arith.constant 0 : index
    %227 = vector.load %arg4[%c1_95, %c0_96, %c0_97] : memref<2x32x96xbf16, #tpu.memory_space<vmem>>, vector<1x32x96xbf16>
    %228 = vector.shape_cast %227 : vector<1x32x96xbf16> to vector<32x96xbf16>
    %cst_98 = arith.constant dense<0.000000e+00> : vector<8x96xf32>
    %229 = tpu.matmul %226, %228, %cst_98 {dimension_numbers = #tpu.dot_dimension_numbers<[1], [0], [0], [1], [0, 0, 1, 1], [], []>} : vector<8x32xbf16>, vector<32x96xbf16>, vector<8x96xf32> -> vector<8x96xf32>
    %c1_99 = arith.constant 1 : index
    %c0_100 = arith.constant 0 : index
    %c0_101 = arith.constant 0 : index
    %230 = vector.load %arg5[%c1_99, %c0_100, %c0_101] : memref<2x1x96xf32, #tpu.memory_space<vmem>>, vector<1x1x96xf32>
    %231 = vector.shape_cast %230 : vector<1x1x96xf32> to vector<1x96xf32>
    %232 = vector.broadcast %231 : vector<1x96xf32> to vector<8x96xf32>
    %233 = arith.addf %229, %232 : vector<8x96xf32>
    %234 = vector.extract_strided_slice %233 {offsets = [0, 0], sizes = [8, 8], strides = [1, 1]} : vector<8x96xf32> to vector<8x8xf32>
    %235 = arith.truncf %234 : vector<8x8xf32> to vector<8x8xbf16>
    %236 = vector.extract_strided_slice %233 {offsets = [0, 32], sizes = [8, 8], strides = [1, 1]} : vector<8x96xf32> to vector<8x8xf32>
    %237 = arith.truncf %236 : vector<8x8xf32> to vector<8x8xbf16>
    %238 = vector.extract_strided_slice %233 {offsets = [0, 64], sizes = [8, 8], strides = [1, 1]} : vector<8x96xf32> to vector<8x8xf32>
    %239 = arith.truncf %238 : vector<8x8xf32> to vector<8x8xbf16>
    %cst_102 = arith.constant dense<0.000000e+00> : vector<8x8xf32>
    %240 = tpu.matmul %235, %237, %cst_102 {dimension_numbers = #tpu.dot_dimension_numbers<[1], [1], [0], [0], [0, 0, 1, 0], [], []>} : vector<8x8xbf16>, vector<8x8xbf16>, vector<8x8xf32> -> vector<8x8xf32>
    %cst_103 = arith.constant 0.353553385 : f32
    %241 = vector.broadcast %cst_103 : f32 to vector<8x8xf32>
    %242 = arith.mulf %240, %241 : vector<8x8xf32>
    %cst_104 = arith.constant -1.000000e+30 : f32
    %243 = vector.broadcast %cst_104 : f32 to vector<8x8xf32>
    %244 = arith.select %3, %242, %243 : vector<8x8xi1>, vector<8x8xf32>
    %cst_105 = arith.constant dense<0xFF800000> : vector<8xf32>
    %245 = vector.multi_reduction <maximumf>, %244, %cst_105 [1] : vector<8x8xf32> to vector<8xf32>
    %246 = vector.shape_cast %245 : vector<8xf32> to vector<8x1xf32>
    %247 = vector.broadcast %246 : vector<8x1xf32> to vector<8x8xf32>
    %248 = arith.subf %244, %247 : vector<8x8xf32>
    %249 = math.exp %248 : vector<8x8xf32>
    %cst_106 = arith.constant dense<0.000000e+00> : vector<8xf32>
    %250 = vector.multi_reduction <add>, %249, %cst_106 [1] : vector<8x8xf32> to vector<8xf32>
    %251 = vector.shape_cast %250 : vector<8xf32> to vector<8x1xf32>
    %252 = arith.truncf %249 : vector<8x8xf32> to vector<8x8xbf16>
    %cst_107 = arith.constant dense<0.000000e+00> : vector<8x8xf32>
    %253 = tpu.matmul %252, %239, %cst_107 {dimension_numbers = #tpu.dot_dimension_numbers<[1], [0], [0], [1], [0, 0, 1, 1], [], []>} : vector<8x8xbf16>, vector<8x8xbf16>, vector<8x8xf32> -> vector<8x8xf32>
    %254 = tpu.reciprocal %251 {approx = true} : vector<8x1xf32> -> vector<8x1xf32>
    %255 = vector.broadcast %254 : vector<8x1xf32> to vector<8x8xf32>
    %256 = arith.mulf %253, %255 : vector<8x8xf32>
    %c0_108 = arith.constant 0 : index
    %c0_109 = arith.constant 0 : index
    %257 = vector.load %arg18[%c0_108, %c0_109] : memref<8x32xf32, #tpu.memory_space<vmem>>, vector<8x8xf32>
    tpu.vector_store %arg18[%c0_108, %c0_109], %256 {strides = array<i32>} : memref<8x32xf32, #tpu.memory_space<vmem>>, vector<8x8xf32>,
    %258 = vector.extract_strided_slice %233 {offsets = [0, 8], sizes = [8, 8], strides = [1, 1]} : vector<8x96xf32> to vector<8x8xf32>
    %259 = arith.truncf %258 : vector<8x8xf32> to vector<8x8xbf16>
    %260 = vector.extract_strided_slice %233 {offsets = [0, 40], sizes = [8, 8], strides = [1, 1]} : vector<8x96xf32> to vector<8x8xf32>
    %261 = arith.truncf %260 : vector<8x8xf32> to vector<8x8xbf16>
    %262 = vector.extract_strided_slice %233 {offsets = [0, 72], sizes = [8, 8], strides = [1, 1]} : vector<8x96xf32> to vector<8x8xf32>
    %263 = arith.truncf %262 : vector<8x8xf32> to vector<8x8xbf16>
    %cst_110 = arith.constant dense<0.000000e+00> : vector<8x8xf32>
    %264 = tpu.matmul %259, %261, %cst_110 {dimension_numbers = #tpu.dot_dimension_numbers<[1], [1], [0], [0], [0, 0, 1, 0], [], []>} : vector<8x8xbf16>, vector<8x8xbf16>, vector<8x8xf32> -> vector<8x8xf32>
    %cst_111 = arith.constant 0.353553385 : f32
    %265 = vector.broadcast %cst_111 : f32 to vector<8x8xf32>
    %266 = arith.mulf %264, %265 : vector<8x8xf32>
    %cst_112 = arith.constant -1.000000e+30 : f32
    %267 = vector.broadcast %cst_112 : f32 to vector<8x8xf32>
    %268 = arith.select %3, %266, %267 : vector<8x8xi1>, vector<8x8xf32>
    %cst_113 = arith.constant dense<0xFF800000> : vector<8xf32>
    %269 = vector.multi_reduction <maximumf>, %268, %cst_113 [1] : vector<8x8xf32> to vector<8xf32>
    %270 = vector.shape_cast %269 : vector<8xf32> to vector<8x1xf32>
    %271 = vector.broadcast %270 : vector<8x1xf32> to vector<8x8xf32>
    %272 = arith.subf %268, %271 : vector<8x8xf32>
    %273 = math.exp %272 : vector<8x8xf32>
    %cst_114 = arith.constant dense<0.000000e+00> : vector<8xf32>
    %274 = vector.multi_reduction <add>, %273, %cst_114 [1] : vector<8x8xf32> to vector<8xf32>
    %275 = vector.shape_cast %274 : vector<8xf32> to vector<8x1xf32>
    %276 = arith.truncf %273 : vector<8x8xf32> to vector<8x8xbf16>
    %cst_115 = arith.constant dense<0.000000e+00> : vector<8x8xf32>
    %277 = tpu.matmul %276, %263, %cst_115 {dimension_numbers = #tpu.dot_dimension_numbers<[1], [0], [0], [1], [0, 0, 1, 1], [], []>} : vector<8x8xbf16>, vector<8x8xbf16>, vector<8x8xf32> -> vector<8x8xf32>
    %278 = tpu.reciprocal %275 {approx = true} : vector<8x1xf32> -> vector<8x1xf32>
    %279 = vector.broadcast %278 : vector<8x1xf32> to vector<8x8xf32>
    %280 = arith.mulf %277, %279 : vector<8x8xf32>
    %c0_116 = arith.constant 0 : index
    %c8_117 = arith.constant 8 : index
    %281 = vector.load %arg18[%c0_116, %c8_117] : memref<8x32xf32, #tpu.memory_space<vmem>>, vector<8x8xf32>
    tpu.vector_store %arg18[%c0_116, %c8_117], %280 {strides = array<i32>} : memref<8x32xf32, #tpu.memory_space<vmem>>, vector<8x8xf32>,
    %282 = vector.extract_strided_slice %233 {offsets = [0, 16], sizes = [8, 8], strides = [1, 1]} : vector<8x96xf32> to vector<8x8xf32>
    %283 = arith.truncf %282 : vector<8x8xf32> to vector<8x8xbf16>
    %284 = vector.extract_strided_slice %233 {offsets = [0, 48], sizes = [8, 8], strides = [1, 1]} : vector<8x96xf32> to vector<8x8xf32>
    %285 = arith.truncf %284 : vector<8x8xf32> to vector<8x8xbf16>
    %286 = vector.extract_strided_slice %233 {offsets = [0, 80], sizes = [8, 8], strides = [1, 1]} : vector<8x96xf32> to vector<8x8xf32>
    %287 = arith.truncf %286 : vector<8x8xf32> to vector<8x8xbf16>
    %cst_118 = arith.constant dense<0.000000e+00> : vector<8x8xf32>
    %288 = tpu.matmul %283, %285, %cst_118 {dimension_numbers = #tpu.dot_dimension_numbers<[1], [1], [0], [0], [0, 0, 1, 0], [], []>} : vector<8x8xbf16>, vector<8x8xbf16>, vector<8x8xf32> -> vector<8x8xf32>
    %cst_119 = arith.constant 0.353553385 : f32
    %289 = vector.broadcast %cst_119 : f32 to vector<8x8xf32>
    %290 = arith.mulf %288, %289 : vector<8x8xf32>
    %cst_120 = arith.constant -1.000000e+30 : f32
    %291 = vector.broadcast %cst_120 : f32 to vector<8x8xf32>
    %292 = arith.select %3, %290, %291 : vector<8x8xi1>, vector<8x8xf32>
    %cst_121 = arith.constant dense<0xFF800000> : vector<8xf32>
    %293 = vector.multi_reduction <maximumf>, %292, %cst_121 [1] : vector<8x8xf32> to vector<8xf32>
    %294 = vector.shape_cast %293 : vector<8xf32> to vector<8x1xf32>
    %295 = vector.broadcast %294 : vector<8x1xf32> to vector<8x8xf32>
    %296 = arith.subf %292, %295 : vector<8x8xf32>
    %297 = math.exp %296 : vector<8x8xf32>
    %cst_122 = arith.constant dense<0.000000e+00> : vector<8xf32>
    %298 = vector.multi_reduction <add>, %297, %cst_122 [1] : vector<8x8xf32> to vector<8xf32>
    %299 = vector.shape_cast %298 : vector<8xf32> to vector<8x1xf32>
    %300 = arith.truncf %297 : vector<8x8xf32> to vector<8x8xbf16>
    %cst_123 = arith.constant dense<0.000000e+00> : vector<8x8xf32>
    %301 = tpu.matmul %300, %287, %cst_123 {dimension_numbers = #tpu.dot_dimension_numbers<[1], [0], [0], [1], [0, 0, 1, 1], [], []>} : vector<8x8xbf16>, vector<8x8xbf16>, vector<8x8xf32> -> vector<8x8xf32>
    %302 = tpu.reciprocal %299 {approx = true} : vector<8x1xf32> -> vector<8x1xf32>
    %303 = vector.broadcast %302 : vector<8x1xf32> to vector<8x8xf32>
    %304 = arith.mulf %301, %303 : vector<8x8xf32>
    %c0_124 = arith.constant 0 : index
    %c16_125 = arith.constant 16 : index
    %305 = vector.load %arg18[%c0_124, %c16_125] : memref<8x32xf32, #tpu.memory_space<vmem>>, vector<8x8xf32>
    tpu.vector_store %arg18[%c0_124, %c16_125], %304 {strides = array<i32>} : memref<8x32xf32, #tpu.memory_space<vmem>>, vector<8x8xf32>,
    %306 = vector.extract_strided_slice %233 {offsets = [0, 24], sizes = [8, 8], strides = [1, 1]} : vector<8x96xf32> to vector<8x8xf32>
    %307 = arith.truncf %306 : vector<8x8xf32> to vector<8x8xbf16>
    %308 = vector.extract_strided_slice %233 {offsets = [0, 56], sizes = [8, 8], strides = [1, 1]} : vector<8x96xf32> to vector<8x8xf32>
    %309 = arith.truncf %308 : vector<8x8xf32> to vector<8x8xbf16>
    %310 = vector.extract_strided_slice %233 {offsets = [0, 88], sizes = [8, 8], strides = [1, 1]} : vector<8x96xf32> to vector<8x8xf32>
    %311 = arith.truncf %310 : vector<8x8xf32> to vector<8x8xbf16>
    %cst_126 = arith.constant dense<0.000000e+00> : vector<8x8xf32>
    %312 = tpu.matmul %307, %309, %cst_126 {dimension_numbers = #tpu.dot_dimension_numbers<[1], [1], [0], [0], [0, 0, 1, 0], [], []>} : vector<8x8xbf16>, vector<8x8xbf16>, vector<8x8xf32> -> vector<8x8xf32>
    %cst_127 = arith.constant 0.353553385 : f32
    %313 = vector.broadcast %cst_127 : f32 to vector<8x8xf32>
    %314 = arith.mulf %312, %313 : vector<8x8xf32>
    %cst_128 = arith.constant -1.000000e+30 : f32
    %315 = vector.broadcast %cst_128 : f32 to vector<8x8xf32>
    %316 = arith.select %3, %314, %315 : vector<8x8xi1>, vector<8x8xf32>
    %cst_129 = arith.constant dense<0xFF800000> : vector<8xf32>
    %317 = vector.multi_reduction <maximumf>, %316, %cst_129 [1] : vector<8x8xf32> to vector<8xf32>
    %318 = vector.shape_cast %317 : vector<8xf32> to vector<8x1xf32>
    %319 = vector.broadcast %318 : vector<8x1xf32> to vector<8x8xf32>
    %320 = arith.subf %316, %319 : vector<8x8xf32>
    %321 = math.exp %320 : vector<8x8xf32>
    %cst_130 = arith.constant dense<0.000000e+00> : vector<8xf32>
    %322 = vector.multi_reduction <add>, %321, %cst_130 [1] : vector<8x8xf32> to vector<8xf32>
    %323 = vector.shape_cast %322 : vector<8xf32> to vector<8x1xf32>
    %324 = arith.truncf %321 : vector<8x8xf32> to vector<8x8xbf16>
    %cst_131 = arith.constant dense<0.000000e+00> : vector<8x8xf32>
    %325 = tpu.matmul %324, %311, %cst_131 {dimension_numbers = #tpu.dot_dimension_numbers<[1], [0], [0], [1], [0, 0, 1, 1], [], []>} : vector<8x8xbf16>, vector<8x8xbf16>, vector<8x8xf32> -> vector<8x8xf32>
    %326 = tpu.reciprocal %323 {approx = true} : vector<8x1xf32> -> vector<8x1xf32>
    %327 = vector.broadcast %326 : vector<8x1xf32> to vector<8x8xf32>
    %328 = arith.mulf %325, %327 : vector<8x8xf32>
    %c0_132 = arith.constant 0 : index
    %c24_133 = arith.constant 24 : index
    %329 = vector.load %arg18[%c0_132, %c24_133] : memref<8x32xf32, #tpu.memory_space<vmem>>, vector<8x8xf32>
    tpu.vector_store %arg18[%c0_132, %c24_133], %328 {strides = array<i32>} : memref<8x32xf32, #tpu.memory_space<vmem>>, vector<8x8xf32>,
    %c0_134 = arith.constant 0 : index
    %c0_135 = arith.constant 0 : index
    %330 = vector.load %arg18[%c0_134, %c0_135] : memref<8x32xf32, #tpu.memory_space<vmem>>, vector<8x32xf32>
    %331 = arith.truncf %330 : vector<8x32xf32> to vector<8x32xbf16>
    %c1_136 = arith.constant 1 : index
    %c0_137 = arith.constant 0 : index
    %c0_138 = arith.constant 0 : index
    %332 = vector.load %arg6[%c1_136, %c0_137, %c0_138] : memref<2x32x32xbf16, #tpu.memory_space<vmem>>, vector<1x32x32xbf16>
    %333 = vector.shape_cast %332 : vector<1x32x32xbf16> to vector<32x32xbf16>
    %cst_139 = arith.constant dense<0.000000e+00> : vector<8x32xf32>
    %334 = tpu.matmul %331, %333, %cst_139 {dimension_numbers = #tpu.dot_dimension_numbers<[1], [0], [0], [1], [0, 0, 1, 1], [], []>} : vector<8x32xbf16>, vector<32x32xbf16>, vector<8x32xf32> -> vector<8x32xf32>
    %335 = arith.addf %199, %334 : vector<8x32xf32>
    %c1_140 = arith.constant 1 : index
    %c0_141 = arith.constant 0 : index
    %c0_142 = arith.constant 0 : index
    %336 = vector.load %arg7[%c1_140, %c0_141, %c0_142] : memref<2x1x32xf32, #tpu.memory_space<vmem>>, vector<1x1x32xf32>
    %337 = vector.shape_cast %336 : vector<1x1x32xf32> to vector<1x32xf32>
    %338 = vector.broadcast %337 : vector<1x32xf32> to vector<8x32xf32>
    %339 = arith.addf %335, %338 : vector<8x32xf32>
    %c1_143 = arith.constant 1 : index
    %c0_144 = arith.constant 0 : index
    %c0_145 = arith.constant 0 : index
    %340 = vector.load %arg8[%c1_143, %c0_144, %c0_145] : memref<2x1x32xf32, #tpu.memory_space<vmem>>, vector<1x1x32xf32>
    %341 = vector.shape_cast %340 : vector<1x1x32xf32> to vector<1x32xf32>
    %c1_146 = arith.constant 1 : index
    %c0_147 = arith.constant 0 : index
    %c0_148 = arith.constant 0 : index
    %342 = vector.load %arg9[%c1_146, %c0_147, %c0_148] : memref<2x1x32xf32, #tpu.memory_space<vmem>>, vector<1x1x32xf32>
    %343 = vector.shape_cast %342 : vector<1x1x32xf32> to vector<1x32xf32>
    %cst_149 = arith.constant dense<0.000000e+00> : vector<8xf32>
    %344 = vector.multi_reduction <add>, %339, %cst_149 [1] : vector<8x32xf32> to vector<8xf32>
    %345 = vector.shape_cast %344 : vector<8xf32> to vector<8x1xf32>
    %cst_150 = arith.constant 3.200000e+01 : f32
    %346 = vector.broadcast %cst_150 : f32 to vector<8x1xf32>
    %347 = arith.divf %345, %346 : vector<8x1xf32>
    %348 = vector.broadcast %347 : vector<8x1xf32> to vector<8x32xf32>
    %349 = arith.subf %339, %348 : vector<8x32xf32>
    %350 = arith.mulf %349, %349 : vector<8x32xf32>
    %cst_151 = arith.constant dense<0.000000e+00> : vector<8xf32>
    %351 = vector.multi_reduction <add>, %350, %cst_151 [1] : vector<8x32xf32> to vector<8xf32>
    %352 = vector.shape_cast %351 : vector<8xf32> to vector<8x1xf32>
    %cst_152 = arith.constant 3.200000e+01 : f32
    %353 = vector.broadcast %cst_152 : f32 to vector<8x1xf32>
    %354 = arith.divf %352, %353 : vector<8x1xf32>
    %355 = vector.broadcast %347 : vector<8x1xf32> to vector<8x32xf32>
    %356 = arith.subf %339, %355 : vector<8x32xf32>
    %cst_153 = arith.constant 9.99999974E-6 : f32
    %357 = vector.broadcast %cst_153 : f32 to vector<8x1xf32>
    %358 = arith.addf %354, %357 : vector<8x1xf32>
    %359 = math.rsqrt %358 : vector<8x1xf32>
    %360 = vector.broadcast %359 : vector<8x1xf32> to vector<8x32xf32>
    %361 = arith.mulf %356, %360 : vector<8x32xf32>
    %362 = vector.broadcast %341 : vector<1x32xf32> to vector<8x32xf32>
    %363 = arith.mulf %361, %362 : vector<8x32xf32>
    %364 = vector.broadcast %343 : vector<1x32xf32> to vector<8x32xf32>
    %365 = arith.addf %363, %364 : vector<8x32xf32>
    %366 = arith.truncf %365 : vector<8x32xf32> to vector<8x32xbf16>
    %c1_154 = arith.constant 1 : index
    %c0_155 = arith.constant 0 : index
    %c0_156 = arith.constant 0 : index
    %367 = vector.load %arg10[%c1_154, %c0_155, %c0_156] : memref<2x32x128xbf16, #tpu.memory_space<vmem>>, vector<1x32x128xbf16>
    %368 = vector.shape_cast %367 : vector<1x32x128xbf16> to vector<32x128xbf16>
    %cst_157 = arith.constant dense<0.000000e+00> : vector<8x128xf32>
    %369 = tpu.matmul %366, %368, %cst_157 {dimension_numbers = #tpu.dot_dimension_numbers<[1], [0], [0], [1], [0, 0, 1, 1], [], []>} : vector<8x32xbf16>, vector<32x128xbf16>, vector<8x128xf32> -> vector<8x128xf32>
    %c1_158 = arith.constant 1 : index
    %c0_159 = arith.constant 0 : index
    %c0_160 = arith.constant 0 : index
    %370 = vector.load %arg11[%c1_158, %c0_159, %c0_160] : memref<2x1x128xf32, #tpu.memory_space<vmem>>, vector<1x1x128xf32>
    %371 = vector.shape_cast %370 : vector<1x1x128xf32> to vector<1x128xf32>
    %372 = vector.broadcast %371 : vector<1x128xf32> to vector<8x128xf32>
    %373 = arith.addf %369, %372 : vector<8x128xf32>
    %cst_161 = arith.constant 5.000000e-01 : f32
    %374 = vector.broadcast %cst_161 : f32 to vector<8x128xf32>
    %375 = arith.mulf %374, %373 : vector<8x128xf32>
    %cst_162 = arith.constant 4.471500e-02 : f32
    %376 = vector.broadcast %cst_162 : f32 to vector<8x128xf32>
    %377 = arith.mulf %376, %373 : vector<8x128xf32>
    %378 = arith.mulf %377, %373 : vector<8x128xf32>
    %379 = arith.mulf %378, %373 : vector<8x128xf32>
    %380 = arith.addf %373, %379 : vector<8x128xf32>
    %cst_163 = arith.constant 0.797884583 : f32
    %381 = vector.broadcast %cst_163 : f32 to vector<8x128xf32>
    %382 = arith.mulf %381, %380 : vector<8x128xf32>
    %383 = math.tanh %382 : vector<8x128xf32>
    %cst_164 = arith.constant 1.000000e+00 : f32
    %384 = vector.broadcast %cst_164 : f32 to vector<8x128xf32>
    %385 = arith.addf %384, %383 : vector<8x128xf32>
    %386 = arith.mulf %375, %385 : vector<8x128xf32>
    %387 = arith.truncf %386 : vector<8x128xf32> to vector<8x128xbf16>
    %c1_165 = arith.constant 1 : index
    %c0_166 = arith.constant 0 : index
    %c0_167 = arith.constant 0 : index
    %388 = vector.load %arg12[%c1_165, %c0_166, %c0_167] : memref<2x128x32xbf16, #tpu.memory_space<vmem>>, vector<1x128x32xbf16>
    %389 = vector.shape_cast %388 : vector<1x128x32xbf16> to vector<128x32xbf16>
    %cst_168 = arith.constant dense<0.000000e+00> : vector<8x32xf32>
    %390 = tpu.matmul %387, %389, %cst_168 {dimension_numbers = #tpu.dot_dimension_numbers<[1], [0], [0], [1], [0, 0, 1, 1], [], []>} : vector<8x128xbf16>, vector<128x32xbf16>, vector<8x32xf32> -> vector<8x32xf32>
    %391 = arith.addf %339, %390 : vector<8x32xf32>
    %c1_169 = arith.constant 1 : index
    %c0_170 = arith.constant 0 : index
    %c0_171 = arith.constant 0 : index
    %392 = vector.load %arg13[%c1_169, %c0_170, %c0_171] : memref<2x1x32xf32, #tpu.memory_space<vmem>>, vector<1x1x32xf32>
    %393 = vector.shape_cast %392 : vector<1x1x32xf32> to vector<1x32xf32>
    %394 = vector.broadcast %393 : vector<1x32xf32> to vector<8x32xf32>
    %395 = arith.addf %391, %394 : vector<8x32xf32>
    %c0_172 = arith.constant 0 : index
    %c0_173 = arith.constant 0 : index
    %396 = vector.load %arg14[%c0_172, %c0_173] : memref<1x32xf32, #tpu.memory_space<vmem>>, vector<1x32xf32>
    %c0_174 = arith.constant 0 : index
    %c0_175 = arith.constant 0 : index
    %397 = vector.load %arg15[%c0_174, %c0_175] : memref<1x32xf32, #tpu.memory_space<vmem>>, vector<1x32xf32>
    %cst_176 = arith.constant dense<0.000000e+00> : vector<8xf32>
    %398 = vector.multi_reduction <add>, %395, %cst_176 [1] : vector<8x32xf32> to vector<8xf32>
    %399 = vector.shape_cast %398 : vector<8xf32> to vector<8x1xf32>
    %cst_177 = arith.constant 3.200000e+01 : f32
    %400 = vector.broadcast %cst_177 : f32 to vector<8x1xf32>
    %401 = arith.divf %399, %400 : vector<8x1xf32>
    %402 = vector.broadcast %401 : vector<8x1xf32> to vector<8x32xf32>
    %403 = arith.subf %395, %402 : vector<8x32xf32>
    %404 = arith.mulf %403, %403 : vector<8x32xf32>
    %cst_178 = arith.constant dense<0.000000e+00> : vector<8xf32>
    %405 = vector.multi_reduction <add>, %404, %cst_178 [1] : vector<8x32xf32> to vector<8xf32>
    %406 = vector.shape_cast %405 : vector<8xf32> to vector<8x1xf32>
    %cst_179 = arith.constant 3.200000e+01 : f32
    %407 = vector.broadcast %cst_179 : f32 to vector<8x1xf32>
    %408 = arith.divf %406, %407 : vector<8x1xf32>
    %409 = vector.broadcast %401 : vector<8x1xf32> to vector<8x32xf32>
    %410 = arith.subf %395, %409 : vector<8x32xf32>
    %cst_180 = arith.constant 9.99999974E-6 : f32
    %411 = vector.broadcast %cst_180 : f32 to vector<8x1xf32>
    %412 = arith.addf %408, %411 : vector<8x1xf32>
    %413 = math.rsqrt %412 : vector<8x1xf32>
    %414 = vector.broadcast %413 : vector<8x1xf32> to vector<8x32xf32>
    %415 = arith.mulf %410, %414 : vector<8x32xf32>
    %416 = vector.broadcast %396 : vector<1x32xf32> to vector<8x32xf32>
    %417 = arith.mulf %415, %416 : vector<8x32xf32>
    %418 = vector.broadcast %397 : vector<1x32xf32> to vector<8x32xf32>
    %419 = arith.addf %417, %418 : vector<8x32xf32>
    %420 = arith.truncf %419 : vector<8x32xf32> to vector<8x32xbf16>
    %c0_181 = arith.constant 0 : index
    %c0_182 = arith.constant 0 : index
    %421 = vector.load %arg16[%c0_181, %c0_182] : memref<32x128xbf16, #tpu.memory_space<vmem>>, vector<32x128xbf16>
    %cst_183 = arith.constant dense<0.000000e+00> : vector<8x128xf32>
    %422 = tpu.matmul %420, %421, %cst_183 {dimension_numbers = #tpu.dot_dimension_numbers<[1], [0], [0], [1], [0, 0, 1, 1], [], []>} : vector<8x32xbf16>, vector<32x128xbf16>, vector<8x128xf32> -> vector<8x128xf32>
    %c0_184 = arith.constant 0 : index
    %c0_185 = arith.constant 0 : index
    %423 = vector.load %arg17[%c0_184, %c0_185] : memref<8x128xf32, #tpu.memory_space<vmem>>, vector<8x128xf32>
    tpu.vector_store %arg17[%c0_184, %c0_185], %422 {strides = array<i32>} : memref<8x128xf32, #tpu.memory_space<vmem>>, vector<8x128xf32>,
    return
  }
  func.func @transform_0(%arg0: i32) -> (i32, i32) {
    %c0_i32 = arith.constant 0 : i32
    %c0_i32_0 = arith.constant 0 : i32
    return %arg0, %c0_i32 : i32, i32
  }
  func.func @transform_1(%arg0: i32) -> (i32, i32, i32) {
    %c0_i32 = arith.constant 0 : i32
    %c0_i32_0 = arith.constant 0 : i32
    %c0_i32_1 = arith.constant 0 : i32
    %c0_i32_2 = arith.constant 0 : i32
    return %c0_i32, %c0_i32_0, %c0_i32_1 : i32, i32, i32
  }
  func.func @transform_2(%arg0: i32) -> (i32, i32, i32) {
    %c0_i32 = arith.constant 0 : i32
    %c0_i32_0 = arith.constant 0 : i32
    %c0_i32_1 = arith.constant 0 : i32
    %c0_i32_2 = arith.constant 0 : i32
    return %c0_i32, %c0_i32_0, %c0_i32_1 : i32, i32, i32
  }
  func.func @transform_3(%arg0: i32) -> (i32, i32, i32) {
    %c0_i32 = arith.constant 0 : i32
    %c0_i32_0 = arith.constant 0 : i32
    %c0_i32_1 = arith.constant 0 : i32
    %c0_i32_2 = arith.constant 0 : i32
    return %c0_i32, %c0_i32_0, %c0_i32_1 : i32, i32, i32
  }
  func.func @transform_4(%arg0: i32) -> (i32, i32, i32) {
    %c0_i32 = arith.constant 0 : i32
    %c0_i32_0 = arith.constant 0 : i32
    %c0_i32_1 = arith.constant 0 : i32
    %c0_i32_2 = arith.constant 0 : i32
    return %c0_i32, %c0_i32_0, %c0_i32_1 : i32, i32, i32
  }
  func.func @transform_5(%arg0: i32) -> (i32, i32, i32) {
    %c0_i32 = arith.constant 0 : i32
    %c0_i32_0 = arith.constant 0 : i32
    %c0_i32_1 = arith.constant 0 : i32
    %c0_i32_2 = arith.constant 0 : i32
    return %c0_i32, %c0_i32_0, %c0_i32_1 : i32, i32, i32
  }
  func.func @transform_6(%arg0: i32) -> (i32, i32, i32) {
    %c0_i32 = arith.constant 0 : i32
    %c0_i32_0 = arith.constant 0 : i32
    %c0_i32_1 = arith.constant 0 : i32
    %c0_i32_2 = arith.constant 0 : i32
    return %c0_i32, %c0_i32_0, %c0_i32_1 : i32, i32, i32
  }
  func.func @transform_7(%arg0: i32) -> (i32, i32, i32) {
    %c0_i32 = arith.constant 0 : i32
    %c0_i32_0 = arith.constant 0 : i32
    %c0_i32_1 = arith.constant 0 : i32
    %c0_i32_2 = arith.constant 0 : i32
    return %c0_i32, %c0_i32_0, %c0_i32_1 : i32, i32, i32
  }
  func.func @transform_8(%arg0: i32) -> (i32, i32, i32) {
    %c0_i32 = arith.constant 0 : i32
    %c0_i32_0 = arith.constant 0 : i32
    %c0_i32_1 = arith.constant 0 : i32
    %c0_i32_2 = arith.constant 0 : i32
    return %c0_i32, %c0_i32_0, %c0_i32_1 : i32, i32, i32
  }
  func.func @transform_9(%arg0: i32) -> (i32, i32, i32) {
    %c0_i32 = arith.constant 0 : i32
    %c0_i32_0 = arith.constant 0 : i32
    %c0_i32_1 = arith.constant 0 : i32
    %c0_i32_2 = arith.constant 0 : i32
    return %c0_i32, %c0_i32_0, %c0_i32_1 : i32, i32, i32
  }
  func.func @transform_10(%arg0: i32) -> (i32, i32, i32) {
    %c0_i32 = arith.constant 0 : i32
    %c0_i32_0 = arith.constant 0 : i32
    %c0_i32_1 = arith.constant 0 : i32
    %c0_i32_2 = arith.constant 0 : i32
    return %c0_i32, %c0_i32_0, %c0_i32_1 : i32, i32, i32
  }
  func.func @transform_11(%arg0: i32) -> (i32, i32, i32) {
    %c0_i32 = arith.constant 0 : i32
    %c0_i32_0 = arith.constant 0 : i32
    %c0_i32_1 = arith.constant 0 : i32
    %c0_i32_2 = arith.constant 0 : i32
    return %c0_i32, %c0_i32_0, %c0_i32_1 : i32, i32, i32
  }
  func.func @transform_12(%arg0: i32) -> (i32, i32, i32) {
    %c0_i32 = arith.constant 0 : i32
    %c0_i32_0 = arith.constant 0 : i32
    %c0_i32_1 = arith.constant 0 : i32
    %c0_i32_2 = arith.constant 0 : i32
    return %c0_i32, %c0_i32_0, %c0_i32_1 : i32, i32, i32
  }
  func.func @transform_13(%arg0: i32) -> (i32, i32) {
    %c0_i32 = arith.constant 0 : i32
    %c0_i32_0 = arith.constant 0 : i32
    %c0_i32_1 = arith.constant 0 : i32
    return %c0_i32, %c0_i32_0 : i32, i32
  }
  func.func @transform_14(%arg0: i32) -> (i32, i32) {
    %c0_i32 = arith.constant 0 : i32
    %c0_i32_0 = arith.constant 0 : i32
    %c0_i32_1 = arith.constant 0 : i32
    return %c0_i32, %c0_i32_0 : i32, i32
  }
  func.func @transform_15(%arg0: i32) -> (i32, i32) {
    %c0_i32 = arith.constant 0 : i32
    %c0_i32_0 = arith.constant 0 : i32
    %c0_i32_1 = arith.constant 0 : i32
    return %c0_i32, %c0_i32_0 : i32, i32
  }
  func.func @transform_16(%arg0: i32) -> (i32, i32) {
    %c0_i32 = arith.constant 0 : i32
    %c0_i32_0 = arith.constant 0 : i32
    return %arg0, %c0_i32 : i32, i32
  }
}

</mosaic_0001>

<bundles_post_ra>
// kernel: gpt2lm_forward.1
= control target key start
LH: loop header
LB: loop body
LE: loop exit
PB: predicated region body
PF: predicated region fallthrough
CT: control target
= control target key end

     0   :  { %s2972_s21 = smov 0   ;;  %s3413_s0 = inlined_call_operand.vmem [shape: f32[16,32], index: 0, kind: input, shape index: {}]   ;;  %s3414_s1 = inlined_call_operand.vmem [shape: f32[2,1,32], index: 1, kind: input, shape index: {}]   ;;  %s3415_s2 = inlined_call_operand.vmem [shape: f32[2,1,32], index: 2, kind: input, shape index: {}]   ;;  %s3416_s3 = inlined_call_operand.vmem [shape: bf16[2,32,96], index: 3, kind: input, shape index: {}]   ;;  %s3417_s4 = inlined_call_operand.vmem [shape: f32[2,1,96], index: 4, kind: input, shape index: {}]   ;;  %s3418_s5 = inlined_call_operand.vmem [shape: bf16[2,32,32], index: 5, kind: input, shape index: {}]   ;;  %s3419_s6 = inlined_call_operand.vmem [shape: f32[2,1,32], index: 6, kind: input, shape index: {}]   ;;  %s3420_s7 = inlined_call_operand.vmem [shape: f32[2,1,32], index: 7, kind: input, shape index: {}]   ;;  %s3421_s8 = inlined_call_operand.vmem [shape: f32[2,1,32], index: 8, kind: input, shape index: {}]   ;;  %s3422_s9 = inlined_call_operand.vmem [shape: bf16[2,32,128], index: 9, kind: input, shape index: {}]   ;;  %s3423_s10 = inlined_call_operand.vmem [shape: f32[2,1,128], index: 10, kind: input, shape index: {}]   ;;  %s3424_s11 = inlined_call_operand.vmem [shape: bf16[2,128,32], index: 11, kind: input, shape index: {}]   ;;  %s3425_s12 = inlined_call_operand.vmem [shape: f32[2,1,32], index: 12, kind: input, shape index: {}]   ;;  %s3426_s13 = inlined_call_operand.vmem [shape: f32[1,32], index: 13, kind: input, shape index: {}]   ;;  %s3427_s14 = inlined_call_operand.vmem [shape: f32[1,32], index: 14, kind: input, shape index: {}]   ;;  %s3428_s15 = inlined_call_operand.vmem [shape: bf16[32,128], index: 15, kind: input, shape index: {}]   ;;  %s3429_s16 = inlined_call_operand.vmem [shape: f32[16,128], index: 16, kind: output, shape index: {}]  }
   0x1   :  { %3440 = sst [smem:[#allocation3_spill]] %s3413_s0 }
   0x2 LB: > { %s2384_s22 = sadd.s32 4294967295, %s2869_s21   ;;  %p2388_p0 = scmp.ge.s32.totalorder %s2869_s21, 1  ;;  %s2869_s21 = sphi %s2972_s21, %s26_s21  }
   0x3   : > { %p461_p1 = scmp.lt.s32.totalorder %s2869_s21, 3 }
   0x5   : > { %p462_p2 = pnand %p2388_p0, %p461_p1 }
   0x6   : > { %p509_p3 = scmp.lt.s32.totalorder (!%p462_p2), %s2384_s22, 1  ;;  %vm526_vm0 = vcmask (!%p462_p2), 261120   ;;  %s3441_s26 = sld [smem:[#allocation3_spill]] (!%p462_p2)  ;;  %v2787_v7 = vld [vmem:[%s3416_s3] sm:$0xff] (!%p462_p2)   ;;  %v2871_v8 = vmov (!%p462_p2), 0.0   ;;  %vm2872_vm1 = vmmov (!%p462_p2), 0   ;;  %v519_v38 = vlaneseq (!%p462_p2) }
   0x7   : > { %465 = sbr.rel (%p462_p2) target bundleno = 5727 (0x165f), region = 84  ;;  %2571 = vmatprep.subr.bf16.mxu1 (!%p462_p2), %v2871_v8  ;;  %2575 = vmatprep.mubr.msk.bf16.mxu1 (!%p462_p2), %vm2872_vm1, %v2871_v8  ;;  %v2788_v9 = vld [vmem:[%s3416_s3 + $0x8] sm:$0xff] (!%p462_p2)   ;;  %v2391_v14 = vld [vmem:[%s3414_s1] ss:$0 sm:$0xff] (!%p462_p2)  ;;  %s2875_s28 = smov (!%p462_p2), 88   ;;  %vm626_vm2 = vcmask (!%p462_p2), 64512  }
   0x8   : > { %2572 = vmatpush3.bf16.msra.mxu1 (!%p462_p2), %v2787_v7  ;;  %2585 = vmatprep.subr.bf16.mxu0 (!%p462_p2), %v2871_v8  ;;  %v2392_v16 = vld [vmem:[%s3415_s2] ss:$0 sm:$0xff] (!%p462_p2)  ;;  %s2876_s29 = smov (!%p462_p2), 80   ;;  %s3438_s30 = smov (!%p462_p2), 112   ;;  %v520_v39 = vshrl.u32 (!%p462_p2), %v519_v38, 7  ;;  %v522_v40 = vand.u32 (!%p462_p2), 127, %v519_v38 }
   0x9   : > { %2573 = vmatprep.subr.bf16.mxu1 (!%p462_p2), %v2871_v8  ;;  %2587 = vmatprep.mubr.msk.bf16.mxu0 (!%p462_p2), %vm2872_vm1, %v2871_v8  ;;  %v2393_v20 = vld [vmem:[%s3417_s4] ss:$0 sm:$0xff] (!%p462_p2)  ;;  %s2878_s0 = smov (!%p462_p2), 72   ;;  %s3437_s17 = smov (!%p462_p2), 104   ;;  %vm690_vm4 = vcmask (!%p462_p2), 1043456   ;;  %vm853_vm5 = vcmask (!%p462_p2), 130112  }
   0xa   : > { %vm3057_vm3 = vcmp.le.s32.totalorder (!%p462_p2), %v522_v40, %v520_v39  ;;  %s2880_s18 = smov (!%p462_p2), 64   ;;  %s3431_s19 = smov (!%p462_p2), 56   ;;  %vm971_vm6 = vcmask (!%p462_p2), 195712   ;;  %vm1089_vm7 = vcmask (!%p462_p2), 261312  }
   0xb   : > { %s3433_s20 = smov (!%p462_p2), 48   ;;  %s3432_s24 = smov (!%p462_p2), 40  }
   0xc   : > { %2574 = vmatpush3.bf16.msra.mxu1 (!%p462_p2), %v2788_v9  ;;  %s3434_s25 = smov (!%p462_p2), 8  }
   0xd   : > { %2579 = vmatprep.subr.bf16.mxu1 (!%p462_p2), %v2871_v8 }
   0xe   : > { %s3455_s22 = smov (!%p509_p3, %s2384_s22), 1 }
   0xf   : > { %s3430_s23 = sshll.u32 %s3455_s22, 3 }
  0x10   : > { %s512_s27 = scalar_lea.vmem %s3441_s26, %s3430_s23  ;;  %s3439_s26 = smov 120  }
  0x11   : > { %v2988_v0 = vld [vmem:[%s512_s27] sm:$0xff]  ;;  %s2874_s27 = smov 96   ;;  %s3435_s23 = smov 24  }
  0x12   : > { %v527_v1 = vsel %vm526_vm0, %v2988_v0, 0.0 }
  0x13   : > { %528 = vadd.xlane.f32.xlu0 %v527_v1 }
  0xa0   : > { %v529_v2 = vpop.xlane.xlu0 %528 }
  0xa1   : > { %v531_v3 = vmul.f32 0.03125, %v529_v2 }
  0xa3   : > { %v532_v4 = vsub.f32 %v2988_v0, %v531_v3 }
  0xa5   : > { %v533_v5 = vmul.f32 %v532_v4, %v532_v4 }
  0xa7   : > { %v534_v6 = vsel %vm526_vm0, %v533_v5, 0.0 }
  0xa8   : > { %535 = vadd.xlane.f32.xlu0 %v534_v6 }
 0x135   : > { %v536_v10 = vpop.xlane.xlu0 %535 }
 0x136   : > { %v537_v11 = vmul.f32 0.03125, %v536_v10 }
 0x138   : > { %v538_v12 = vadd.f32 1e-05, %v537_v11 }
 0x13a   : > { %2817 = vrsqrt.f32 %v538_v12 }
 0x144   : > { %v2818_v13 = vpop.eup %2817 }
 0x145   : > { %v540_v15 = vmul.f32 %v2818_v13, %v532_v4 }
 0x147   : > { %v547_v17 = vmul.f32 %v2391_v14, %v540_v15 }
 0x149   : > { %v554_v18 = vadd.f32 %v2392_v16, %v547_v17 }
 0x14b   : > { %v555_v19 = vpack.c.bf16 %v554_v18, %v554_v18 }
 0x14d   : > { %2576 = vmatmul.mubr.msk.bf16.vlgmr.msra.gmra.mrb[0].mxu1 %vm526_vm0, %v555_v19 }
 0x14e   : > { %2581 = vmatprep.mubr.msk.bf16.mxu1 %vm2872_vm1, %v2871_v8 }
 0x220   : > { %v616_v21 = vpop.f32.mrb[0].mxu1 }
 0x221   : > { %v617_v22 = vadd.f32 %v2393_v20, %v616_v21  ;;  %v2577_v23 = vpop.f32.mrb[1].mxu1 }
 0x222   : > { %v619_v24 = vpop.f32.mrb[2].mxu1 }
 0x223   : > { %v3020_v25 = vpack.c.bf16 %v617_v22, %v617_v22  ;;  %v2578_v26 = vpop.f32.mrb[3].mxu1 }
 0x225   : > { %737 = vrot.lane.b32.xlu0 %v3020_v25, %s3439_s26  ;;  %624 = vrot.lane.b32.xlu1 %v3020_v25, %s2874_s27  ;;  %s3450_s26 = smov 8  }
 0x229   : > { %739 = vrot.lane.b32.xlu1 %v3020_v25, %s2875_s28 }
 0x22d   : > { %857 = vrot.lane.b32.xlu1 %v3020_v25, %s2876_s29 }
 0x231   : > { %855 = vrot.lane.b32.xlu1 %v3020_v25, %s3438_s30 }
 0x235   : > { %975 = vrot.lane.b32.xlu1 %v3020_v25, %s2878_s0 }
 0x239   : > { %973 = vrot.lane.b32.xlu1 %v3020_v25, %s3437_s17 }
 0x297   : > { %v625_v27 = vpop.permute.xlu1 %624  ;;  %v738_v32 = vpop.permute.xlu0 %737 }
 0x298   : > { %v631_v28 = vsel %vm626_vm2, %v625_v27, 0 }
 0x299   : > { %2580 = vmatpush3.bf16.xpose.msra.mxu1 %v631_v28 }
 0x29a   : > { %2591 = vmatprep.subr.bf16.mxu1 %v2871_v8 }
 0x29b   : > { %v740_v29 = vpop.permute.xlu1 %739 }
 0x29c   : > { %v745_v30 = vsel %vm626_vm2, %v740_v29, 0 }
 0x29f   : > { %v858_v31 = vpop.permute.xlu1 %857 }
 0x2a0   : > { %2582 = vmatmul.mubr.msk.bf16.vlgmr.msra.gmra.mrb[4].mxu1 %vm626_vm2, %v3020_v25  ;;  %v863_v34 = vsel %vm626_vm2, %v858_v31, 0 }
 0x2a1   : > { %2592 = vmatpush3.bf16.xpose.msra.mxu1 %v745_v30  ;;  %2593 = vmatprep.mubr.msk.bf16.mxu1 %vm2872_vm1, %v2871_v8 }
 0x2a2   : > { %2603 = vmatprep.subr.bf16.mxu1 %v2871_v8 }
 0x2a3   : > { %v856_v33 = vpop.permute.xlu1 %855 }
 0x2a7   : > { %v976_v35 = vpop.permute.xlu1 %975 }
 0x2a8   : > { %2594 = vmatmul.mubr.msk.bf16.vlgmr.msra.gmra.mrb[8].mxu1 %vm626_vm2, %v738_v32  ;;  %v981_v36 = vsel %vm626_vm2, %v976_v35, 0 }
 0x2a9   : > { %2604 = vmatpush3.bf16.xpose.msra.mxu1 %v863_v34  ;;  %2605 = vmatprep.mubr.msk.bf16.mxu1 %vm2872_vm1, %v2871_v8 }
 0x2aa   : > { %2615 = vmatprep.subr.bf16.mxu1 %v2871_v8 }
 0x2ab   : > { %v974_v37 = vpop.permute.xlu1 %973 }
 0x2b0   : > { %2606 = vmatmul.mubr.msk.bf16.vlgmr.msra.gmra.mrb[12].mxu1 %vm626_vm2, %v856_v33 }
 0x2b1   : > { %2616 = vmatpush3.bf16.xpose.msra.mxu1 %v981_v36  ;;  %2617 = vmatprep.mubr.msk.bf16.mxu1 %vm2872_vm1, %v2871_v8 }
 0x2b2   : > { %2627 = vmatprep.subr.bf16.mxu1 %v2871_v8 }
 0x2b8   : > { %2618 = vmatmul.mubr.msk.bf16.vlgmr.msra.gmra.mrb[16].mxu1 %vm626_vm2, %v974_v37 }
 0x2b9   : > { %2631 = vmatprep.mubr.msk.bf16.mxu1 %vm2872_vm1, %v2871_v8 }
 0x373   : > { %v667_v41 = vpop.f32.mrb[4].mxu1 }
 0x374   : > { %v673_v43 = vmul.f32 0.35355338, %v667_v41  ;;  %v2583_v44 = vpop.f32.mrb[5].mxu1 }
 0x375   : > { %v670_v45 = vpop.f32.mrb[6].mxu1 }
 0x376   : > { %v2584_v46 = vpop.f32.mrb[7].mxu1  ;;  %v674_v47 = vsel %vm3057_vm3, %v673_v43, -1e+30 }
 0x377   : > { %v675_v48 = vsel %vm626_vm2, %v674_v47, -inf }
 0x378   : > { %676 = vmax.xlane.f32.xlu1 %v675_v48 }
 0x37b   : > { %v781_v49 = vpop.f32.mrb[8].mxu1 }
 0x37c   : > { %v787_v50 = vmul.f32 0.35355338, %v781_v49  ;;  %v2595_v51 = vpop.f32.mrb[9].mxu1 }
 0x37d   : > { %v784_v52 = vpop.f32.mrb[10].mxu1 }
 0x37e   : > { %v2596_v53 = vpop.f32.mrb[11].mxu1  ;;  %v788_v54 = vsel %vm3057_vm3, %v787_v50, -1e+30 }
 0x37f   : > { %v789_v55 = vsel %vm626_vm2, %v788_v54, -inf }
 0x380   : > { %790 = vmax.xlane.f32.xlu0 %v789_v55 }
 0x383   : > { %v899_v56 = vpop.f32.mrb[12].mxu1 }
 0x384   : > { %v2607_v57 = vpop.f32.mrb[13].mxu1  ;;  %v905_v4 = vmul.f32 0.35355338, %v899_v56 }
 0x385   : > { %v902_v58 = vpop.f32.mrb[14].mxu1  ;;  %v2789_v57 = vld [vmem:[%s3418_s5] sm:$0xff]  }
 0x386   : > { %v2608_v59 = vpop.f32.mrb[15].mxu1  ;;  %v906_v5 = vsel %vm3057_vm3, %v905_v4, -1e+30  ;;  %2628 = vmatpush3.bf16.msra.mxu1 %v2789_v57 }
 0x387   : > { %v907_v6 = vsel %vm626_vm2, %v906_v5, -inf  ;;  %2629 = vmatprep.subr.bf16.mxu1 %v2871_v8 }
 0x389   : > { %685 = vrot.lane.b32.xlu1 %v3020_v25, %s2880_s18 }
 0x38b   : > { %v1017_v60 = vpop.f32.mrb[16].mxu1 }
 0x38c   : > { %v1023_v61 = vmul.f32 0.35355338, %v1017_v60  ;;  %v2619_v62 = vpop.f32.mrb[17].mxu1  ;;  %v2790_v60 = vld [vmem:[%s3418_s5 + $0x8] sm:$0xff]  }
 0x38d   : > { %v1020_v63 = vpop.f32.mrb[18].mxu1  ;;  %2630 = vmatpush3.bf16.msra.mxu1 %v2790_v60 }
 0x38e   : > { %v2620_v1 = vpop.f32.mrb[19].mxu1  ;;  %v1024_v2 = vsel %vm3057_vm3, %v1023_v61, -1e+30  ;;  %2643 = vmatprep.subr.bf16.mxu1 %v2871_v8 }
 0x38f   : > { %v1025_v3 = vsel %vm626_vm2, %v1024_v2, -inf }
 0x390   : > { %1026 = vmax.xlane.f32.xlu0 %v1025_v3 }
 0x3a6   : > { %799 = vrot.lane.b32.xlu0 %v3020_v25, %s3431_s19  ;;  %s3449_s19 = smov 56  }
 0x3ad   : > { %908 = vmax.xlane.f32.xlu1 %v907_v6 }
 0x3be   : > { %917 = vrot.lane.b32.xlu1 %v3020_v25, %s3433_s20 }
 0x3c2   : > { %1035 = vrot.lane.b32.xlu1 %v3020_v25, %s3432_s24  ;;  %s3451_s24 = smov 16  }
 0x405   : > { %v677_v7 = vpop.xlane.xlu1 %676 }
 0x406   : > { %v678_v9 = vsub.f32 %v674_v47, %v677_v7 }
 0x408   : > { %v679_v10 = vmul.f32 1.442695, %v678_v9 }
 0x409   : > { %v686_v11 = vpop.permute.xlu1 %685 }
 0x40a   : > { %2819 = vpow2.f32 %v679_v10  ;;  %v692_v12 = vsel %vm690_vm4, %v686_v11, 0 }
 0x40b   : > { %2586 = vmatpush3.bf16.msra.mxu0 %v692_v12 }
 0x40c   : > { %2597 = vmatprep.subr.bf16.mxu0 %v2871_v8 }
 0x40d   : > { %v791_v13 = vpop.xlane.xlu0 %790 }
 0x40e   : > { %v792_v14 = vsub.f32 %v788_v54, %v791_v13 }
 0x410   : > { %v793_v15 = vmul.f32 1.442695, %v792_v14 }
 0x412   : > { %2821 = vpow2.f32 %v793_v15  ;;  %v2408_v15 = vld [vmem:[%s3419_s6] ss:$0 sm:$0xff] }
 0x414   : > { %v2820_v16 = vpop.eup %2819 }
 0x415   : > { %v684_v17 = vpack.c.bf16 %v2820_v16, %v2820_v16  ;;  %v681_v28 = vsel %vm626_vm2, %v2820_v16, 0.0 }
 0x417   : > { %2588 = vmatmul.mubr.msk.bf16.vlgmr.msra.gmra.mrb[0].mxu0 %vm626_vm2, %v684_v17 }
 0x418   : > { %2599 = vmatprep.mubr.msk.bf16.mxu0 %vm2872_vm1, %v2871_v8 }
 0x41c   : > { %v2822_v18 = vpop.eup %2821 }
 0x41d   : > { %v1027_v19 = vpop.xlane.xlu0 %1026  ;;  %v795_v20 = vsel %vm626_vm2, %v2822_v18, 0.0  ;;  %v798_v25 = vpack.c.bf16 %v2822_v18, %v2822_v18 }
 0x41e   : > { %v1028_v21 = vsub.f32 %v1024_v2, %v1027_v19  ;;  %796 = vadd.xlane.f32.xlu0 %v795_v20 }
 0x420   : > { %v1029_v22 = vmul.f32 1.442695, %v1028_v21 }
 0x421   : > { %v800_v23 = vpop.permute.xlu0 %799 }
 0x422   : > { %2823 = vpow2.f32 %v1029_v22  ;;  %v805_v24 = vsel %vm690_vm4, %v800_v23, 0 }
 0x423   : > { %2598 = vmatpush3.bf16.msra.mxu0 %v805_v24 }
 0x424   : > { %2609 = vmatprep.subr.bf16.mxu0 %v2871_v8 }
 0x426   : > { %2600 = vmatmul.mubr.msk.bf16.vlgmr.msra.gmra.mrb[4].mxu0 %vm626_vm2, %v798_v25 }
 0x427   : > { %2611 = vmatprep.mubr.msk.bf16.mxu0 %vm2872_vm1, %v2871_v8 }
 0x42c   : > { %v2824_v26 = vpop.eup %2823 }
 0x42d   : > { %v1031_v27 = vsel %vm626_vm2, %v2824_v26, 0.0  ;;  %v1034_v39 = vpack.c.bf16 %v2824_v26, %v2824_v26 }
 0x42e   : > { %1032 = vadd.xlane.f32.xlu0 %v1031_v27  ;;  %v2792_v27 = vld [vmem:[%s3422_s9 + $0x8] sm:$0xff]  }
 0x432   : > { %682 = vadd.xlane.f32.xlu0 %v681_v28  ;;  %v2793_v28 = vld [vmem:[%s3424_s11] sm:$0xff]  }
 0x43a   : > { %v909_v29 = vpop.xlane.xlu1 %908 }
 0x43b   : > { %v910_v30 = vsub.f32 %v906_v5, %v909_v29 }
 0x43d   : > { %v911_v31 = vmul.f32 1.442695, %v910_v30 }
 0x43e   : > { %v918_v32 = vpop.permute.xlu1 %917 }
 0x43f   : > { %2825 = vpow2.f32 %v911_v31  ;;  %v923_v33 = vsel %vm690_vm4, %v918_v32, 0 }
 0x440   : > { %2610 = vmatpush3.bf16.msra.mxu0 %v923_v33  ;;  %v2409_v33 = vld [vmem:[%s3420_s7] ss:$0 sm:$0xff] }
 0x441   : > { %2621 = vmatprep.subr.bf16.mxu0 %v2871_v8 }
 0x442   : > { %v1036_v35 = vpop.permute.xlu1 %1035 }
 0x443   : > { %v1041_v38 = vsel %vm690_vm4, %v1036_v35, 0  ;;  %v2410_v35 = vld [vmem:[%s3421_s8] ss:$0 sm:$0xff] }
 0x449   : > { %v2826_v34 = vpop.eup %2825 }
 0x44a   : > { %v913_v36 = vsel %vm626_vm2, %v2826_v34, 0.0  ;;  %v916_v37 = vpack.c.bf16 %v2826_v34, %v2826_v34 }
 0x44b   : > { %914 = vadd.xlane.f32.xlu1 %v913_v36 }
 0x44c   : > { %2612 = vmatmul.mubr.msk.bf16.vlgmr.msra.gmra.mrb[8].mxu0 %vm626_vm2, %v916_v37 }
 0x44d   : > { %2622 = vmatpush3.bf16.msra.mxu0 %v1041_v38  ;;  %2623 = vmatprep.mubr.msk.bf16.mxu0 %vm2872_vm1, %v2871_v8 }
 0x44e   : > { %2635 = vmatprep.subr.bf16.mxu0 %v2871_v8 }
 0x454   : > { %2624 = vmatmul.mubr.msk.bf16.vlgmr.msra.gmra.mrb[12].mxu0 %vm626_vm2, %v1034_v39  ;;  %v2794_v39 = vld [vmem:[%s3424_s11 + $0x8] sm:$0xff]  }
 0x455   : > { %2639 = vmatprep.mubr.msk.bf16.mxu0 %vm2872_vm1, %v2871_v8 }
 0x4ab   : > { %v797_v40 = vpop.xlane.xlu0 %796 }
 0x4bb   : > { %v1033_v41 = vpop.xlane.xlu0 %1032 }
 0x4bf   : > { %v683_v43 = vpop.xlane.xlu0 %682 }
 0x4c0   : > { %2827 = vrcp.f32 %v683_v43  ;;  %v2797_v43 = vld [vmem:[%s3424_s11 + $0x20] sm:$0xff]  }
 0x4c1   : > { %2829 = vrcp.f32 %v797_v40  ;;  %v2795_v40 = vld [vmem:[%s3424_s11 + $0x10] sm:$0xff]  }
 0x4ca   : > { %v2828_v44 = vpop.eup %2827 }
 0x4cb   : > { %v2830_v50 = vpop.eup %2829 }
 0x4d8   : > { %v915_v56 = vpop.xlane.xlu1 %914 }
 0x4d9   : > { %2831 = vrcp.f32 %v915_v56 }
 0x4da   : > { %2833 = vrcp.f32 %v1033_v41  ;;  %v2796_v41 = vld [vmem:[%s3424_s11 + $0x18] sm:$0xff]  }
 0x4e3   : > { %v2832_v58 = vpop.eup %2831 }
 0x4e4   : > { %v2834_v2 = vpop.eup %2833 }
 0x4ea   : > { %v728_v45 = vpop.f32.mrb[0].mxu0 }
 0x4eb   : > { %v735_v46 = vmul.f32 %v2828_v44, %v728_v45  ;;  %v2589_v47 = vpop.f32.mrb[1].mxu0  ;;  %v2798_v44 = vld [vmem:[%s3424_s11 + $0x28] sm:$0xff]   ;;  %v2799_v45 = vld [vmem:[%s3424_s11 + $0x30] sm:$0xff]  }
 0x4ec   : > { %v731_v48 = vpop.f32.mrb[2].mxu0  ;;  %v2411_v47 = vld [vmem:[%s3423_s10] ss:$0 sm:$0xff] }
 0x4ed   : > { %736 = vst.msk [vmem:[#allocation2] sm:$0xff] %vm626_vm2, %v735_v46  ;;  %v2590_v49 = vpop.f32.mrb[3].mxu0  ;;  %v2800_v46 = vld [vmem:[%s3424_s11 + $0x38] sm:$0xff]  }
 0x4f9   : > { %v841_v51 = vpop.f32.mrb[4].mxu0 }
 0x4fa   : > { %v848_v52 = vmul.f32 %v2830_v50, %v841_v51  ;;  %v2601_v53 = vpop.f32.mrb[5].mxu0 }
 0x4fb   : > { %v844_v54 = vpop.f32.mrb[6].mxu0 }
 0x4fc   : > { %v2602_v55 = vpop.f32.mrb[7].mxu0  ;;  %850 = vrot.lane.b32.xlu1 %v848_v52, %s3434_s25  ;;  %s3436_s25 = smov 16  }
 0x51f   : > { %v959_v59 = vpop.f32.mrb[8].mxu0 }
 0x520   : > { %v966_v61 = vmul.f32 %v2832_v58, %v959_v59  ;;  %v2613_v62 = vpop.f32.mrb[9].mxu0 }
 0x521   : > { %v962_v63 = vpop.f32.mrb[10].mxu0 }
 0x522   : > { %968 = vrot.lane.b32.xlu0 %v966_v61, %s3436_s25  ;;  %v2614_v1 = vpop.f32.mrb[11].mxu0 }
 0x523   : > { %v2423_v1 = vld [vmem:[%s3425_s12] ss:$0 sm:$0xff] }
 0x527   : > { %v1077_v3 = vpop.f32.mrb[12].mxu0 }
 0x528   : > { %v1084_v4 = vmul.f32 %v2834_v2, %v1077_v3  ;;  %v2625_v5 = vpop.f32.mrb[13].mxu0 }
 0x529   : > { %v1080_v6 = vpop.f32.mrb[14].mxu0 }
 0x52a   : > { %v2626_v7 = vpop.f32.mrb[15].mxu0  ;;  %1086 = vrot.lane.b32.xlu1 %v1084_v4, %s3435_s23  ;;  %s3452_s23 = smov 24  }
 0x56e   : > { %v851_v9 = vpop.permute.xlu1 %850 }
 0x56f   : > { %854 = vst.msk [vmem:[#allocation2] sm:$0xff] %vm853_vm5, %v851_v9 }
 0x594   : > { %v969_v10 = vpop.permute.xlu0 %968 }
 0x595   : > { %972 = vst.msk [vmem:[#allocation2] sm:$0xff] %vm971_vm6, %v969_v10 }
 0x59c   : > { %v1087_v11 = vpop.permute.xlu1 %1086 }
 0x59d   : > { %1090 = vst.msk [vmem:[#allocation2] sm:$0xff] %vm1089_vm7, %v1087_v11 }
 0x5a4   : > { %v1091_v12 = vld [vmem:[#allocation2] sm:$0xff] }
 0x5a5   : > { %v1092_v13 = vpack.c.bf16 %v1091_v12, %v1091_v12 }
 0x5a7   : > { %2632 = vmatmul.mubr.msk.bf16.vlgmr.msra.gmra.mrb[20].mxu1 %vm526_vm0, %v1092_v13 }
 0x5a8   : > { %2659 = vmatprep.mubr.msk.bf16.mxu1 %vm2872_vm1, %v2871_v8  ;;  %2644 = vmatpush3.bf16.msra.mxu1 %v2793_v28 }
 0x5a9   : > { %2645 = vmatprep.subr.bf16.mxu1 %v2871_v8 }
 0x5ac   : > { %2646 = vmatpush3.bf16.msra.mxu1 %v2794_v39 }
 0x5ad   : > { %2647 = vmatprep.subr.bf16.mxu1 %v2871_v8 }
 0x5b0   : > { %2648 = vmatpush3.bf16.msra.mxu1 %v2795_v40 }
 0x5b1   : > { %2649 = vmatprep.subr.bf16.mxu1 %v2871_v8 }
 0x5b4   : > { %2650 = vmatpush3.bf16.msra.mxu1 %v2796_v41 }
 0x5b5   : > { %2651 = vmatprep.subr.bf16.mxu1 %v2871_v8 }
 0x5b8   : > { %2652 = vmatpush3.bf16.msra.mxu1 %v2797_v43 }
 0x5b9   : > { %2653 = vmatprep.subr.bf16.mxu1 %v2871_v8 }
 0x5bc   : > { %2654 = vmatpush3.bf16.msra.mxu1 %v2798_v44 }
 0x5bd   : > { %2655 = vmatprep.subr.bf16.mxu1 %v2871_v8 }
 0x5c0   : > { %2656 = vmatpush3.bf16.msra.mxu1 %v2799_v45 }
 0x5c1   : > { %2657 = vmatprep.subr.bf16.mxu1 %v2871_v8 }
 0x5c4   : > { %2658 = vmatpush3.bf16.msra.mxu1 %v2800_v46 }
 0x5c5   : > { %2689 = vmatprep.subr.bf16.mxu1 %v2871_v8 }
 0x67a   : > { %v1146_v14 = vpop.f32.mrb[20].mxu1 }
 0x67b   : > { %v1152_v16 = vadd.f32 %v1146_v14, %v2988_v0  ;;  %v2633_v17 = vpop.f32.mrb[21].mxu1  ;;  %v2791_v0 = vld [vmem:[%s3422_s9] sm:$0xff]   ;;  %v2801_v14 = vld [vmem:[%s3416_s3 + $0x10] sm:$0xff]  }
 0x67c   : > { %v1149_v18 = vpop.f32.mrb[22].mxu1  ;;  %2636 = vmatpush3.bf16.msra.mxu0 %v2791_v0 }
 0x67d   : > { %v3127_v19 = vadd.f32 %v2408_v15, %v1152_v16  ;;  %v2634_v20 = vpop.f32.mrb[23].mxu1  ;;  %2637 = vmatprep.subr.bf16.mxu0 %v2871_v8  ;;  %v2802_v15 = vld [vmem:[%s3416_s3 + $0x18] sm:$0xff]  }
 0x67e   : > { %v2426_v20 = vld [vmem:[%s3414_s1 + $0x1] ss:$0 sm:$0xff] }
 0x67f   : > { %v1163_v21 = vsel %vm526_vm0, %v3127_v19, 0.0 }
 0x680   : > { %1164 = vadd.xlane.f32.xlu1 %v1163_v21  ;;  %2638 = vmatpush3.bf16.msra.mxu0 %v2792_v27 }
 0x681   : > { %2663 = vmatprep.subr.bf16.mxu0 %v2871_v8 }
 0x70d   : > { %v1165_v22 = vpop.xlane.xlu1 %1164 }
 0x70e   : > { %v1166_v23 = vmul.f32 0.03125, %v1165_v22  ;;  %v2427_v22 = vld [vmem:[%s3415_s2 + $0x1] ss:$0 sm:$0xff] }
 0x710   : > { %v1167_v24 = vsub.f32 %v3127_v19, %v1166_v23 }
 0x712   : > { %v1168_v25 = vmul.f32 %v1167_v24, %v1167_v24 }
 0x714   : > { %v1169_v26 = vsel %vm526_vm0, %v1168_v25, 0.0 }
 0x715   : > { %1170 = vadd.xlane.f32.xlu0 %v1169_v26  ;;  %v2433_v26 = vld [vmem:[%s3417_s4 + $0x1] ss:$0 sm:$0xff] }
 0x7a2   : > { %v1171_v29 = vpop.xlane.xlu0 %1170 }
 0x7a3   : > { %v1172_v30 = vmul.f32 0.03125, %v1171_v29 }
 0x7a5   : > { %v1173_v31 = vadd.f32 1e-05, %v1172_v30 }
 0x7a7   : > { %2835 = vrsqrt.f32 %v1173_v31 }
 0x7b1   : > { %v2836_v32 = vpop.eup %2835 }
 0x7b2   : > { %v1175_v34 = vmul.f32 %v2836_v32, %v1167_v24 }
 0x7b4   : > { %v1182_v36 = vmul.f32 %v2409_v33, %v1175_v34 }
 0x7b6   : > { %v1189_v37 = vadd.f32 %v2410_v35, %v1182_v36 }
 0x7b8   : > { %v1190_v38 = vpack.c.bf16 %v1189_v37, %v1189_v37 }
 0x7ba   : > { %2640 = vmatmul.mubr.msk.bf16.vlgmr.msra.gmra.mrb[16].mxu0 %vm526_vm0, %v1190_v38 }
 0x7bb   : > { %2667 = vmatprep.mubr.msk.bf16.mxu0 %vm2872_vm1, %v2871_v8  ;;  %2664 = vmatpush3.bf16.msra.mxu0 %v2801_v14 }
 0x7bc   : > { %2665 = vmatprep.subr.bf16.mxu0 %v2871_v8 }
 0x7bf   : > { %2666 = vmatpush3.bf16.msra.mxu0 %v2802_v15 }
 0x7c0   : > { %2671 = vmatprep.subr.bf16.mxu0 %v2871_v8 }
 0x88d   : > { %v1251_v48 = vpop.f32.mrb[16].mxu0 }
 0x88e   : > { %v1252_v49 = vadd.f32 %v2411_v47, %v1251_v48  ;;  %v2641_v50 = vpop.f32.mrb[17].mxu0 }
 0x88f   : > { %v1254_v51 = vpop.f32.mrb[18].mxu0 }
 0x890   : > { %v1258_v52 = vmul.f32 0.044715, %v1252_v49  ;;  %v2642_v53 = vpop.f32.mrb[19].mxu0  ;;  %v1257_v59 = vmul.f32 0.5, %v1252_v49 }
 0x892   : > { %v1259_v54 = vmul.f32 %v1258_v52, %v1252_v49 }
 0x894   : > { %v1260_v55 = vmul.f32 %v1259_v54, %v1252_v49 }
 0x896   : > { %v1261_v56 = vadd.f32 %v1260_v55, %v1252_v49 }
 0x898   : > { %v1262_v57 = vmul.f32 0.7978846, %v1261_v56 }
 0x89a   : > { %2837 = vtanh.f32 %v1262_v57 }
 0x8a4   : > { %v2838_v58 = vpop.eup %2837 }
 0x8a5   : > { %v1264_v60 = vadd.f32 1.0, %v2838_v58 }
 0x8a7   : > { %v1265_v61 = vmul.f32 %v1264_v60, %v1257_v59 }
 0x8a9   : > { %v1266_v62 = vpack.c.bf16 %v1265_v61, %v1265_v61 }
 0x8ab   : > { %2660 = vmatmul.mubr.bf16.vlgmr.msra.gmra.mrb[24].mxu1 %v1266_v62 }
 0x8ac   : > { %2691 = vmatprep.mubr.msk.bf16.mxu1 %vm2872_vm1, %v2871_v8 }
 0x97e   : > { %v1365_v63 = vpop.f32.mrb[24].mxu1 }
 0x97f   : > { %v1371_v2 = vadd.f32 %v1365_v63, %v3127_v19  ;;  %v2661_v3 = vpop.f32.mrb[25].mxu1 }
 0x980   : > { %v1368_v4 = vpop.f32.mrb[26].mxu1 }
 0x981   : > { %v3191_v5 = vadd.f32 %v2423_v1, %v1371_v2  ;;  %v2662_v6 = vpop.f32.mrb[27].mxu1 }
 0x983   : > { %v1384_v7 = vsel %vm526_vm0, %v3191_v5, 0.0 }
 0x984   : > { %1385 = vadd.xlane.f32.xlu0 %v1384_v7 }
 0xa11   : > { %v1386_v9 = vpop.xlane.xlu0 %1385 }
 0xa12   : > { %v1387_v10 = vmul.f32 0.03125, %v1386_v9 }
 0xa14   : > { %v1388_v11 = vsub.f32 %v3191_v5, %v1387_v10 }
 0xa16   : > { %v1389_v12 = vmul.f32 %v1388_v11, %v1388_v11 }
 0xa18   : > { %v1390_v13 = vsel %vm526_vm0, %v1389_v12, 0.0 }
 0xa19   : > { %1391 = vadd.xlane.f32.xlu1 %v1390_v13 }
 0xaa6   : > { %v1392_v16 = vpop.xlane.xlu1 %1391 }
 0xaa7   : > { %v1393_v17 = vmul.f32 0.03125, %v1392_v16 }
 0xaa9   : > { %v1394_v18 = vadd.f32 1e-05, %v1393_v17 }
 0xaab   : > { %2839 = vrsqrt.f32 %v1394_v18 }
 0xab5   : > { %v2840_v19 = vpop.eup %2839 }
 0xab6   : > { %v1396_v21 = vmul.f32 %v2840_v19, %v1388_v11 }
 0xab8   : > { %v1403_v23 = vmul.f32 %v2426_v20, %v1396_v21 }
 0xaba   : > { %v1410_v24 = vadd.f32 %v2427_v22, %v1403_v23 }
 0xabc   : > { %v1411_v25 = vpack.c.bf16 %v1410_v24, %v1410_v24 }
 0xabe   : > { %2668 = vmatmul.mubr.msk.bf16.vlgmr.msra.gmra.mrb[20].mxu0 %vm526_vm0, %v1411_v25 }
 0xabf   : > { %2673 = vmatprep.mubr.msk.bf16.mxu0 %vm2872_vm1, %v2871_v8 }
 0xb91   : > { %v1474_v0 = vpop.f32.mrb[20].mxu0 }
 0xb92   : > { %v1475_v27 = vadd.f32 %v2433_v26, %v1474_v0  ;;  %v2669_v28 = vpop.f32.mrb[21].mxu0 }
 0xb93   : > { %v1477_v29 = vpop.f32.mrb[22].mxu0 }
 0xb94   : > { %v3217_v30 = vpack.c.bf16 %v1475_v27, %v1475_v27  ;;  %v2670_v31 = vpop.f32.mrb[23].mxu0 }
 0xb96   : > { %1482 = vrot.lane.b32.xlu0 %v3217_v30, %s2874_s27  ;;  %s3444_s27 = smov 120  }
 0xb9a   : > { %1595 = vrot.lane.b32.xlu0 %v3217_v30, %s2875_s28  ;;  %s3445_s28 = smov 112  }
 0xb9e   : > { %1712 = vrot.lane.b32.xlu0 %v3217_v30, %s2876_s29  ;;  %s3446_s29 = smov 104  }
 0xba2   : > { %1829 = vrot.lane.b32.xlu0 %v3217_v30, %s2878_s0  ;;  %s3447_s0 = smov 48  }
 0xc08   : > { %v1483_v32 = vpop.permute.xlu0 %1482 }
 0xc09   : > { %v1488_v33 = vsel %vm626_vm2, %v1483_v32, 0 }
 0xc0a   : > { %2672 = vmatpush3.bf16.xpose.msra.mxu0 %v1488_v33 }
 0xc0b   : > { %2677 = vmatprep.subr.bf16.mxu0 %v2871_v8 }
 0xc0c   : > { %v1596_v48 = vpop.permute.xlu0 %1595 }
 0xc0d   : > { %v1601_v50 = vsel %vm626_vm2, %v1596_v48, 0 }
 0xc10   : > { %v1713_v51 = vpop.permute.xlu0 %1712 }
 0xc11   : > { %2674 = vmatmul.mubr.msk.bf16.vlgmr.msra.gmra.mrb[24].mxu0 %vm626_vm2, %v3217_v30  ;;  %v1718_v53 = vsel %vm626_vm2, %v1713_v51, 0 }
 0xc12   : > { %2679 = vmatprep.mubr.msk.bf16.mxu0 %vm2872_vm1, %v2871_v8 }
 0xc14   : > { %v1830_v54 = vpop.permute.xlu0 %1829 }
 0xc15   : > { %v1835_v56 = vsel %vm626_vm2, %v1830_v54, 0 }
 0xce4   : > { %v1524_v34 = vpop.f32.mrb[24].mxu0 }
 0xce5   : > { %v1530_v35 = vmul.f32 0.35355338, %v1524_v34  ;;  %v2675_v36 = vpop.f32.mrb[25].mxu0 }
 0xce6   : > { %v1527_v37 = vpop.f32.mrb[26].mxu0 }
 0xce7   : > { %v2676_v38 = vpop.f32.mrb[27].mxu0  ;;  %v1531_v39 = vsel %vm3057_vm3, %v1530_v35, -1e+30 }
 0xce8   : > { %v1532_v40 = vsel %vm626_vm2, %v1531_v39, -inf }
 0xce9   : > { %1533 = vmax.xlane.f32.xlu1 %v1532_v40 }
 0xcfa   : > { %1542 = vrot.lane.b32.xlu1 %v3217_v30, %s2880_s18  ;;  %s3448_s18 = smov 40  }
 0xcfe   : > { %1593 = vrot.lane.b32.xlu1 %v3217_v30, %s3444_s27 }
 0xd02   : > { %1710 = vrot.lane.b32.xlu1 %v3217_v30, %s3445_s28 }
 0xd06   : > { %1827 = vrot.lane.b32.xlu1 %v3217_v30, %s3446_s29 }
 0xd76   : > { %v1534_v41 = vpop.xlane.xlu1 %1533 }
 0xd77   : > { %v1535_v43 = vsub.f32 %v1531_v39, %v1534_v41 }
 0xd79   : > { %v1536_v44 = vmul.f32 1.442695, %v1535_v43 }
 0xd7a   : > { %v1543_v45 = vpop.permute.xlu1 %1542 }
 0xd7b   : > { %2841 = vpow2.f32 %v1536_v44  ;;  %v1548_v46 = vsel %vm690_vm4, %v1543_v45, 0 }
 0xd7c   : > { %2678 = vmatpush3.bf16.msra.mxu0 %v1548_v46 }
 0xd7d   : > { %2683 = vmatprep.subr.bf16.mxu0 %v2871_v8 }
 0xd7e   : > { %v1594_v52 = vpop.permute.xlu1 %1593 }
 0xd82   : > { %v1711_v55 = vpop.permute.xlu1 %1710 }
 0xd85   : > { %v3246_v47 = vpop.eup %2841 }
 0xd86   : > { %v1541_v49 = vpack.c.bf16 %v3246_v47, %v3246_v47  ;;  %v1828_v57 = vpop.permute.xlu1 %1827  ;;  %v1538_v44 = vsel %vm626_vm2, %v3246_v47, 0.0 }
 0xd88   : > { %2680 = vmatmul.mubr.msk.bf16.vlgmr.msra.gmra.mrb[28].mxu0 %vm626_vm2, %v1541_v49 }
 0xd89   : > { %2684 = vmatpush3.bf16.xpose.msra.mxu0 %v1601_v50  ;;  %2685 = vmatprep.mubr.msk.bf16.mxu0 %vm2872_vm1, %v2871_v8 }
 0xd8a   : > { %2695 = vmatprep.subr.bf16.mxu0 %v2871_v8 }
 0xd90   : > { %2686 = vmatmul.mubr.msk.bf16.vlgmr.msra.gmra.mrb[32].mxu0 %vm626_vm2, %v1594_v52 }
 0xd91   : > { %2696 = vmatpush3.bf16.xpose.msra.mxu0 %v1718_v53  ;;  %2697 = vmatprep.mubr.msk.bf16.mxu0 %vm2872_vm1, %v2871_v8 }
 0xd92   : > { %2707 = vmatprep.subr.bf16.mxu0 %v2871_v8 }
 0xd98   : > { %2698 = vmatmul.mubr.msk.bf16.vlgmr.msra.gmra.mrb[36].mxu0 %vm626_vm2, %v1711_v55 }
 0xd99   : > { %2708 = vmatpush3.bf16.xpose.msra.mxu0 %v1835_v56  ;;  %2709 = vmatprep.mubr.msk.bf16.mxu0 %vm2872_vm1, %v2871_v8 }
 0xd9a   : > { %2719 = vmatprep.subr.bf16.mxu0 %v2871_v8 }
 0xda0   : > { %2710 = vmatmul.mubr.msk.bf16.vlgmr.msra.gmra.mrb[40].mxu0 %vm626_vm2, %v1828_v57 }
 0xda1   : > { %2723 = vmatprep.mubr.msk.bf16.mxu0 %vm2872_vm1, %v2871_v8 }
 0xe5b   : > { %v3268_v58 = vpop.f32.mrb[28].mxu0 }
 0xe5c   : > { %v2681_v59 = vpop.f32.mrb[29].mxu0 }
 0xe5d   : > { %v1587_v60 = vpop.f32.mrb[30].mxu0  ;;  %v2803_v59 = vld [vmem:[%s3418_s5 + $0x10] sm:$0xff]  }
 0xe5e   : > { %v2682_v61 = vpop.f32.mrb[31].mxu0  ;;  %2720 = vmatpush3.bf16.msra.mxu0 %v2803_v59 }
 0xe5f   : > { %v2804_v61 = vld [vmem:[%s3418_s5 + $0x18] sm:$0xff]   ;;  %2721 = vmatprep.subr.bf16.mxu0 %v2871_v8 }
 0xe62   : > { %2722 = vmatpush3.bf16.msra.mxu0 %v2804_v61 }
 0xe63   : > { %v1637_v62 = vpop.f32.mrb[32].mxu0  ;;  %2735 = vmatprep.subr.bf16.mxu0 %v2871_v8 }
 0xe64   : > { %v1643_v63 = vmul.f32 0.35355338, %v1637_v62  ;;  %v2687_v1 = vpop.f32.mrb[33].mxu0 }
 0xe65   : > { %v1640_v2 = vpop.f32.mrb[34].mxu0 }
 0xe66   : > { %v2688_v3 = vpop.f32.mrb[35].mxu0  ;;  %v1644_v4 = vsel %vm3057_vm3, %v1643_v63, -1e+30 }
 0xe67   : > { %v1645_v6 = vsel %vm626_vm2, %v1644_v4, -inf }
 0xe68   : > { %1646 = vmax.xlane.f32.xlu0 %v1645_v6 }
 0xe6b   : > { %v1754_v7 = vpop.f32.mrb[36].mxu0 }
 0xe6c   : > { %v1760_v9 = vmul.f32 0.35355338, %v1754_v7  ;;  %v2699_v10 = vpop.f32.mrb[37].mxu0 }
 0xe6d   : > { %v1757_v11 = vpop.f32.mrb[38].mxu0 }
 0xe6e   : > { %v2700_v12 = vpop.f32.mrb[39].mxu0  ;;  %v1761_v13 = vsel %vm3057_vm3, %v1760_v9, -1e+30 }
 0xe6f   : > { %v1762_v14 = vsel %vm626_vm2, %v1761_v13, -inf }
 0xe70   : > { %1763 = vmax.xlane.f32.xlu1 %v1762_v14 }
 0xe73   : > { %v1871_v15 = vpop.f32.mrb[40].mxu0 }
 0xe74   : > { %v1877_v16 = vmul.f32 0.35355338, %v1871_v15  ;;  %v2711_v17 = vpop.f32.mrb[41].mxu0 }
 0xe75   : > { %v1874_v18 = vpop.f32.mrb[42].mxu0  ;;  %v2453_v17 = vld [vmem:[%s3419_s6 + $0x1] ss:$0 sm:$0xff] }
 0xe76   : > { %v2712_v19 = vpop.f32.mrb[43].mxu0  ;;  %v1878_v20 = vsel %vm3057_vm3, %v1877_v16, -1e+30 }
 0xe77   : > { %v1879_v21 = vsel %vm626_vm2, %v1878_v20, -inf }
 0xe78   : > { %1880 = vmax.xlane.f32.xlu0 %v1879_v21 }
 0xe81   : > { %1772 = vrot.lane.b32.xlu1 %v3217_v30, %s3447_s0 }
 0xe85   : > { %1889 = vrot.lane.b32.xlu1 %v3217_v30, %s3448_s18 }
 0xe8e   : > { %1655 = vrot.lane.b32.xlu0 %v3217_v30, %s3449_s19 }
 0xef5   : > { %v1647_v22 = vpop.xlane.xlu0 %1646 }
 0xef6   : > { %v1648_v23 = vsub.f32 %v1644_v4, %v1647_v22 }
 0xef8   : > { %v1649_v24 = vmul.f32 1.442695, %v1648_v23 }
 0xefa   : > { %2843 = vpow2.f32 %v1649_v24 }
 0xefd   : > { %v1764_v25 = vpop.xlane.xlu1 %1763 }
 0xefe   : > { %v1765_v26 = vsub.f32 %v1761_v13, %v1764_v25 }
 0xf00   : > { %v1766_v42 = vmul.f32 1.442695, %v1765_v26 }
 0xf01   : > { %v1773_v30 = vpop.permute.xlu1 %1772 }
 0xf02   : > { %2845 = vpow2.f32 %v1766_v42  ;;  %v1778_v37 = vsel %vm690_vm4, %v1773_v30, 0  ;;  %v2456_v30 = vld [vmem:[%s3420_s7 + $0x1] ss:$0 sm:$0xff] }
 0xf04   : > { %v2844_v0 = vpop.eup %2843 }
 0xf05   : > { %v1881_v27 = vpop.xlane.xlu0 %1880  ;;  %v1651_v28 = vsel %vm626_vm2, %v2844_v0, 0.0  ;;  %v1654_v35 = vpack.c.bf16 %v2844_v0, %v2844_v0  ;;  %v1890_v38 = vpop.permute.xlu1 %1889 }
 0xf06   : > { %v1882_v29 = vsub.f32 %v1878_v20, %v1881_v27  ;;  %1652 = vadd.xlane.f32.xlu0 %v1651_v28  ;;  %v1895_v43 = vsel %vm690_vm4, %v1890_v38, 0  ;;  %v2806_v27 = vld [vmem:[%s3422_s9 + $0x18] sm:$0xff]   ;;  %v2807_v28 = vld [vmem:[%s3424_s11 + $0x40] sm:$0xff]  }
 0xf08   : > { %v1883_v31 = vmul.f32 1.442695, %v1882_v29 }
 0xf09   : > { %v1656_v32 = vpop.permute.xlu0 %1655 }
 0xf0a   : > { %2847 = vpow2.f32 %v1883_v31  ;;  %v1661_v33 = vsel %vm690_vm4, %v1656_v32, 0 }
 0xf0b   : > { %2690 = vmatpush3.bf16.msra.mxu1 %v1661_v33 }
 0xf0c   : > { %v2846_v34 = vpop.eup %2845  ;;  %2701 = vmatprep.subr.bf16.mxu1 %v2871_v8 }
 0xf0d   : > { %v1768_v36 = vsel %vm626_vm2, %v2846_v34, 0.0  ;;  %v1771_v40 = vpack.c.bf16 %v2846_v34, %v2846_v34 }
 0xf0e   : > { %1769 = vadd.xlane.f32.xlu1 %v1768_v36  ;;  %2692 = vmatmul.mubr.msk.bf16.vlgmr.msra.gmra.mrb[28].mxu1 %vm626_vm2, %v1654_v35  ;;  %v2457_v35 = vld [vmem:[%s3421_s8 + $0x1] ss:$0 sm:$0xff] }
 0xf0f   : > { %2702 = vmatpush3.bf16.msra.mxu1 %v1778_v37  ;;  %2703 = vmatprep.mubr.msk.bf16.mxu1 %vm2872_vm1, %v2871_v8 }
 0xf10   : > { %2713 = vmatprep.subr.bf16.mxu1 %v2871_v8 }
 0xf14   : > { %v2848_v39 = vpop.eup %2847 }
 0xf15   : > { %v1885_v41 = vsel %vm626_vm2, %v2848_v39, 0.0  ;;  %v1888_v45 = vpack.c.bf16 %v2848_v39, %v2848_v39  ;;  %v2808_v39 = vld [vmem:[%s3424_s11 + $0x48] sm:$0xff]  }
 0xf16   : > { %1886 = vadd.xlane.f32.xlu0 %v1885_v41  ;;  %2704 = vmatmul.mubr.msk.bf16.vlgmr.msra.gmra.mrb[32].mxu1 %vm626_vm2, %v1771_v40  ;;  %v2809_v40 = vld [vmem:[%s3424_s11 + $0x50] sm:$0xff]   ;;  %v2810_v41 = vld [vmem:[%s3424_s11 + $0x58] sm:$0xff]  }
 0xf17   : > { %2714 = vmatpush3.bf16.msra.mxu1 %v1895_v43  ;;  %2715 = vmatprep.mubr.msk.bf16.mxu1 %vm2872_vm1, %v2871_v8  ;;  %v2811_v43 = vld [vmem:[%s3424_s11 + $0x60] sm:$0xff]  }
 0xf18   : > { %2727 = vmatprep.subr.bf16.mxu1 %v2871_v8 }
 0xf1a   : > { %1539 = vadd.xlane.f32.xlu0 %v1538_v44  ;;  %v2812_v44 = vld [vmem:[%s3424_s11 + $0x68] sm:$0xff]  }
 0xf1e   : > { %2716 = vmatmul.mubr.msk.bf16.vlgmr.msra.gmra.mrb[36].mxu1 %vm626_vm2, %v1888_v45  ;;  %v2813_v45 = vld [vmem:[%s3424_s11 + $0x70] sm:$0xff]  }
 0xf1f   : > { %2731 = vmatprep.mubr.msk.bf16.mxu1 %vm2872_vm1, %v2871_v8 }
 0xf93   : > { %v1653_v46 = vpop.xlane.xlu0 %1652 }
 0xf9b   : > { %v1770_v52 = vpop.xlane.xlu1 %1769 }
 0xfa3   : > { %v1887_v48 = vpop.xlane.xlu0 %1886 }
 0xfa7   : > { %v1540_v49 = vpop.xlane.xlu0 %1539 }
 0xfa8   : > { %2849 = vrcp.f32 %v1540_v49 }
 0xfa9   : > { %2851 = vrcp.f32 %v1653_v46  ;;  %v2814_v46 = vld [vmem:[%s3424_s11 + $0x78] sm:$0xff]  }
 0xfaa   : > { %2853 = vrcp.f32 %v1770_v52 }
 0xfab   : > { %2855 = vrcp.f32 %v1887_v48  ;;  %v2463_v48 = vld [vmem:[%s3423_s10 + $0x1] ss:$0 sm:$0xff] }
 0xfb2   : > { %v2850_v50 = vpop.eup %2849 }
 0xfb3   : > { %v1591_v51 = vmul.f32 %v2850_v50, %v3268_v58  ;;  %v2852_v47 = vpop.eup %2851 }
 0xfb4   : > { %v2854_v60 = vpop.eup %2853 }
 0xfb5   : > { %1592 = vst.msk [vmem:[#allocation2] sm:$0xff] %vm626_vm2, %v1591_v51  ;;  %v2856_v3 = vpop.eup %2855 }
 0xfe1   : > { %v1697_v53 = vpop.f32.mrb[28].mxu1 }
 0xfe2   : > { %v1704_v54 = vmul.f32 %v2852_v47, %v1697_v53  ;;  %v2693_v55 = vpop.f32.mrb[29].mxu1 }
 0xfe3   : > { %v1700_v56 = vpop.f32.mrb[30].mxu1 }
 0xfe4   : > { %1706 = vrot.lane.b32.xlu1 %v1704_v54, %s3450_s26  ;;  %v2694_v57 = vpop.f32.mrb[31].mxu1 }
 0xfe9   : > { %v1814_v58 = vpop.f32.mrb[32].mxu1 }
 0xfea   : > { %v1821_v62 = vmul.f32 %v2854_v60, %v1814_v58  ;;  %v2705_v63 = vpop.f32.mrb[33].mxu1 }
 0xfeb   : > { %v1817_v1 = vpop.f32.mrb[34].mxu1 }
 0xfec   : > { %1823 = vrot.lane.b32.xlu0 %v1821_v62, %s3451_s24  ;;  %v2706_v2 = vpop.f32.mrb[35].mxu1  ;;  %v2492_v1 = vld [vmem:[%s3425_s12 + $0x1] ss:$0 sm:$0xff] }
 0xff1   : > { %v1931_v4 = vpop.f32.mrb[36].mxu1 }
 0xff2   : > { %v1938_v6 = vmul.f32 %v2856_v3, %v1931_v4  ;;  %v2717_v7 = vpop.f32.mrb[37].mxu1 }
 0xff3   : > { %v1934_v9 = vpop.f32.mrb[38].mxu1 }
 0xff4   : > { %1940 = vrot.lane.b32.xlu1 %v1938_v6, %s3452_s23  ;;  %v2718_v10 = vpop.f32.mrb[39].mxu1  ;;  %s3453_s23 = sshll.u32 %s3455_s22, 3 }
 0xff5   : > { %s516_s29 = scalar_lea.vmem %s3429_s16, %s3453_s23 }
0x1056   : > { %v1707_v11 = vpop.permute.xlu1 %1706 }
0x1057   : > { %1709 = vst.msk [vmem:[#allocation2] sm:$0xff] %vm853_vm5, %v1707_v11 }
0x105e   : > { %v1824_v12 = vpop.permute.xlu0 %1823 }
0x105f   : > { %1826 = vst.msk [vmem:[#allocation2] sm:$0xff] %vm971_vm6, %v1824_v12 }
0x1066   : > { %v1941_v13 = vpop.permute.xlu1 %1940 }
0x1067   : > { %1943 = vst.msk [vmem:[#allocation2] sm:$0xff] %vm1089_vm7, %v1941_v13 }
0x106e   : > { %v1944_v14 = vld [vmem:[#allocation2] sm:$0xff] }
0x106f   : > { %v1945_v15 = vpack.c.bf16 %v1944_v14, %v1944_v14 }
0x1071   : > { %2724 = vmatmul.mubr.msk.bf16.vlgmr.msra.gmra.mrb[44].mxu0 %vm526_vm0, %v1945_v15  ;;  %v2815_v15 = vld [vmem:[%s3428_s15] sm:$0xff]  }
0x1072   : > { %2751 = vmatprep.mubr.msk.bf16.mxu0 %vm2872_vm1, %v2871_v8  ;;  %2736 = vmatpush3.bf16.msra.mxu0 %v2807_v28 }
0x1073   : > { %2737 = vmatprep.subr.bf16.mxu0 %v2871_v8 }
0x1076   : > { %2738 = vmatpush3.bf16.msra.mxu0 %v2808_v39 }
0x1077   : > { %2739 = vmatprep.subr.bf16.mxu0 %v2871_v8 }
0x107a   : > { %2740 = vmatpush3.bf16.msra.mxu0 %v2809_v40 }
0x107b   : > { %2741 = vmatprep.subr.bf16.mxu0 %v2871_v8 }
0x107e   : > { %2742 = vmatpush3.bf16.msra.mxu0 %v2810_v41 }
0x107f   : > { %2743 = vmatprep.subr.bf16.mxu0 %v2871_v8 }
0x1082   : > { %2744 = vmatpush3.bf16.msra.mxu0 %v2811_v43 }
0x1083   : > { %2745 = vmatprep.subr.bf16.mxu0 %v2871_v8 }
0x1086   : > { %2746 = vmatpush3.bf16.msra.mxu0 %v2812_v44 }
0x1087   : > { %2747 = vmatprep.subr.bf16.mxu0 %v2871_v8 }
0x108a   : > { %2748 = vmatpush3.bf16.msra.mxu0 %v2813_v45 }
0x108b   : > { %2749 = vmatprep.subr.bf16.mxu0 %v2871_v8 }
0x108e   : > { %2750 = vmatpush3.bf16.msra.mxu0 %v2814_v46 }
0x1144   : > { %v2000_v16 = vpop.f32.mrb[44].mxu0 }
0x1145   : > { %v2006_v18 = vadd.f32 %v2000_v16, %v3191_v5  ;;  %v2725_v19 = vpop.f32.mrb[45].mxu0  ;;  %v2805_v5 = vld [vmem:[%s3422_s9 + $0x10] sm:$0xff]   ;;  %v2816_v16 = vld [vmem:[%s3428_s15 + $0x8] sm:$0xff]  }
0x1146   : > { %v2003_v20 = vpop.f32.mrb[46].mxu0  ;;  %2728 = vmatpush3.bf16.msra.mxu1 %v2805_v5 }
0x1147   : > { %v3328_v21 = vadd.f32 %v2453_v17, %v2006_v18  ;;  %v2726_v22 = vpop.f32.mrb[47].mxu0  ;;  %2729 = vmatprep.subr.bf16.mxu1 %v2871_v8 }
0x1149   : > { %v2020_v23 = vsel %vm526_vm0, %v3328_v21, 0.0 }
0x114a   : > { %2021 = vadd.xlane.f32.xlu1 %v2020_v23  ;;  %2730 = vmatpush3.bf16.msra.mxu1 %v2806_v27  ;;  %v2494_v23 = vld [vmem:[%s3427_s14] ss:$0 sm:$0xff] }
0x114b   : > { %2755 = vmatprep.subr.bf16.mxu1 %v2871_v8 }
0x11d7   : > { %v2022_v24 = vpop.xlane.xlu1 %2021 }
0x11d8   : > { %v2023_v25 = vmul.f32 0.03125, %v2022_v24 }
0x11da   : > { %v2024_v26 = vsub.f32 %v3328_v21, %v2023_v25 }
0x11dc   : > { %v2025_v42 = vmul.f32 %v2024_v26, %v2024_v26 }
0x11de   : > { %v2026_v0 = vsel %vm526_vm0, %v2025_v42, 0.0 }
0x11df   : > { %2027 = vadd.xlane.f32.xlu0 %v2026_v0 }
0x126c   : > { %v2028_v29 = vpop.xlane.xlu0 %2027 }
0x126d   : > { %v2029_v31 = vmul.f32 0.03125, %v2028_v29 }
0x126f   : > { %v2030_v32 = vadd.f32 1e-05, %v2029_v31 }
0x1271   : > { %2857 = vrsqrt.f32 %v2030_v32 }
0x127b   : > { %v2858_v33 = vpop.eup %2857 }
0x127c   : > { %v2032_v34 = vmul.f32 %v2858_v33, %v2024_v26 }
0x127e   : > { %v2039_v36 = vmul.f32 %v2456_v30, %v2032_v34 }
0x1280   : > { %v2046_v37 = vadd.f32 %v2457_v35, %v2039_v36 }
0x1282   : > { %v2047_v38 = vpack.c.bf16 %v2046_v37, %v2046_v37 }
0x1284   : > { %2732 = vmatmul.mubr.msk.bf16.vlgmr.msra.gmra.mrb[40].mxu1 %vm526_vm0, %v2047_v38 }
0x1285   : > { %2759 = vmatprep.mubr.msk.bf16.mxu1 %vm2872_vm1, %v2871_v8  ;;  %2756 = vmatpush3.bf16.msra.mxu1 %v2815_v15 }
0x1286   : > { %2757 = vmatprep.subr.bf16.mxu1 %v2871_v8 }
0x1289   : > { %2758 = vmatpush3.bf16.msra.mxu1 %v2816_v16 }
0x1357   : > { %v2110_v49 = vpop.f32.mrb[40].mxu1 }
0x1358   : > { %v2111_v50 = vadd.f32 %v2463_v48, %v2110_v49  ;;  %v2733_v51 = vpop.f32.mrb[41].mxu1 }
0x1359   : > { %v2113_v52 = vpop.f32.mrb[42].mxu1 }
0x135a   : > { %v2117_v47 = vmul.f32 0.044715, %v2111_v50  ;;  %v2734_v53 = vpop.f32.mrb[43].mxu1  ;;  %v2116_v60 = vmul.f32 0.5, %v2111_v50 }
0x135c   : > { %v2118_v54 = vmul.f32 %v2117_v47, %v2111_v50 }
0x135e   : > { %v2119_v55 = vmul.f32 %v2118_v54, %v2111_v50 }
0x1360   : > { %v2120_v56 = vadd.f32 %v2119_v55, %v2111_v50 }
0x1362   : > { %v2121_v57 = vmul.f32 0.7978846, %v2120_v56 }
0x1364   : > { %2859 = vtanh.f32 %v2121_v57 }
0x136e   : > { %v2860_v59 = vpop.eup %2859 }
0x136f   : > { %v2123_v58 = vadd.f32 1.0, %v2860_v59 }
0x1371   : > { %v2124_v61 = vmul.f32 %v2123_v58, %v2116_v60 }
0x1373   : > { %v2125_v62 = vpack.c.bf16 %v2124_v61, %v2124_v61 }
0x1375   : > { %2752 = vmatmul.mubr.bf16.vlgmr.msra.gmra.mrb[48].mxu0 %v2125_v62 }
0x1448   : > { %v2225_v63 = vpop.f32.mrb[48].mxu0 }
0x1449   : > { %v2231_v2 = vadd.f32 %v2225_v63, %v3328_v21  ;;  %v2753_v3 = vpop.f32.mrb[49].mxu0  ;;  %v2493_v21 = vld [vmem:[%s3426_s13] ss:$0 sm:$0xff] }
0x144a   : > { %v2228_v4 = vpop.f32.mrb[50].mxu0 }
0x144b   : > { %v2754_v6 = vpop.f32.mrb[51].mxu0  ;;  %v2240_v7 = vadd.f32 %v2492_v1, %v2231_v2 }
0x144d   : > { %v2243_v9 = vsel %vm526_vm0, %v2240_v7, 0.0 }
0x144e   : > { %2244 = vadd.xlane.f32.xlu0 %v2243_v9 }
0x14db   : > { %v2245_v10 = vpop.xlane.xlu0 %2244 }
0x14dc   : > { %v2246_v11 = vmul.f32 0.03125, %v2245_v10 }
0x14de   : > { %v2247_v12 = vsub.f32 %v2240_v7, %v2246_v11 }
0x14e0   : > { %v2248_v13 = vmul.f32 %v2247_v12, %v2247_v12 }
0x14e2   : > { %v2249_v14 = vsel %vm526_vm0, %v2248_v13, 0.0 }
0x14e3   : > { %2250 = vadd.xlane.f32.xlu1 %v2249_v14 }
0x1570   : > { %v2251_v17 = vpop.xlane.xlu1 %2250 }
0x1571   : > { %v2252_v18 = vmul.f32 0.03125, %v2251_v17 }
0x1573   : > { %v2253_v19 = vadd.f32 1e-05, %v2252_v18 }
0x1575   : > { %2861 = vrsqrt.f32 %v2253_v19 }
0x157f   : > { %v2862_v20 = vpop.eup %2861 }
0x1580   : > { %v2255_v22 = vmul.f32 %v2862_v20, %v2247_v12 }
0x1582   : > { %v2262_v24 = vmul.f32 %v2493_v21, %v2255_v22 }
0x1584   : > { %v2269_v25 = vadd.f32 %v2494_v23, %v2262_v24 }
0x1586   : > { %v2270_v26 = vpack.c.bf16 %v2269_v25, %v2269_v25 }
0x1588   : > { %2760 = vmatmul.mubr.msk.bf16.vlgmr.msra.gmra.mrb[44].mxu1 %vm526_vm0, %v2270_v26 }
0x165b   : > { %v2324_v8 = vpop.f32.mrb[44].mxu1 }
0x165c   : > { %2330 = vst [vmem:[%s516_s29] sm:$0xff] %v2324_v8  ;;  %v2761_v42 = vpop.f32.mrb[45].mxu1 }
0x165d   : > { %v2327_v0 = vpop.f32.mrb[46].mxu1 }
0x165e   : > { %v2762_v5 = vpop.f32.mrb[47].mxu1 }
0x165f PF: > { %s26_s21 = sadd.s32 1, %s2869_s21  }
0x1660   : > { %p23_p4 = scmp.ge.s32.totalorder %s26_s21, 4  }
0x1662   :  { %25 = sbr.rel (!%p23_p4) target bundleno = 2 (0x2), region = 126 }

</bundles_post_ra>
